<compile_context>
chip_gen: v7x
topology: tpu7x:2x2x1
jax: 0.10.0
libtpu: 0.0.40
codegen_flags: <defaults>
</compile_context>

<pallas_src>
import functools

import jax
import jax.numpy as jnp
import numpy as np
from jax.experimental import pallas as pl
from jax.experimental.pallas import tpu as pltpu

# ---------------- dimensions (defaults of the PyTorch module) ----------------
NUM_ENC = 6
FILTER_SIZE = 128
DIM_XYZ = 3 + 3 * 2 * NUM_ENC          # 39
DIM_DIR = 3 + 3 * 2 * NUM_ENC          # 39 (use_viewdirs=True)
DIM_IN = DIM_XYZ + DIM_DIR             # 78
DIM_OUT = 4

LINEAR_DIMS = [
    (DIM_IN, FILTER_SIZE),             # layer1
    (FILTER_SIZE, FILTER_SIZE),        # layer2
    (FILTER_SIZE, DIM_OUT),            # layer3
]


def _round_up(a, m):
    return ((a + m - 1) // m) * m


# --------------------------------- kernel ------------------------------------
def _verytiny_nerf_kernel(x_ref, w1_ref, b1_ref, w2_ref, b2_ref, w3_ref, b3_ref,
                          o_ref):
    # x_ref: (tm, 78) f32 (cast to bf16 in-kernel); weights bf16; biases f32;
    # output f32.  Bias-add / ReLU in f32 (v5e-friendly), bf16 only to feed MXU.
    x = x_ref[...].astype(jnp.bfloat16)

    h = jnp.dot(x, w1_ref[...], preferred_element_type=jnp.float32) + b1_ref[...]
    h = jnp.maximum(h, 0.0).astype(jnp.bfloat16)

    h = jnp.dot(h, w2_ref[...], preferred_element_type=jnp.float32) + b2_ref[...]
    h = jnp.maximum(h, 0.0).astype(jnp.bfloat16)

    out = jnp.dot(h, w3_ref[...], preferred_element_type=jnp.float32) + b3_ref[...]
    o_ref[...] = out.astype(o_ref.dtype)


# --------------------------------- wrapper -----------------------------------
@functools.partial(jax.jit, static_argnames=("tile_m",))
def verytiny_nerf_forward(x, params, tile_m=1024):
    n, d = x.shape
    assert d == DIM_IN

    # Keep the row grid >= 2 steps so both v7x TensorCores get work; keep the
    # tile a multiple of 16 for bf16 sublane packing (also satisfies the
    # sublane-divisibility rule for the block shape).
    tile_m_eff = min(tile_m, max(16, _round_up(pl.cdiv(n, 2), 16)))
    grid_m = pl.cdiv(n, tile_m_eff)   # partial trailing block handled by Pallas

    # bf16 weights (MXU fast path), f32 biases; x stays f32 (cast in-kernel).
    flat = []
    for w, b in params:
        flat.append(w.astype(jnp.bfloat16))
        flat.append(b.astype(jnp.float32))

    in_specs = [pl.BlockSpec((tile_m_eff, DIM_IN), lambda i: (i, 0))]
    for p in flat:
        # Weights/biases are resident whole-tensor blocks (constant index_map).
        in_specs.append(pl.BlockSpec(p.shape, lambda i: (0, 0)))

    flops = 2 * n * (DIM_IN * FILTER_SIZE
                     + FILTER_SIZE * FILTER_SIZE
                     + FILTER_SIZE * DIM_OUT)
    weight_bytes = 2 * (DIM_IN * FILTER_SIZE + FILTER_SIZE * FILTER_SIZE
                        + FILTER_SIZE * DIM_OUT) \
                   + 4 * (FILTER_SIZE + FILTER_SIZE + DIM_OUT)
    bytes_accessed = n * (DIM_IN * 4 + DIM_OUT * 4) + weight_bytes

    out = pl.pallas_call(
        _verytiny_nerf_kernel,
        out_shape=jax.ShapeDtypeStruct((n, DIM_OUT), jnp.float32),
        grid=(grid_m,),
        in_specs=in_specs,
        out_specs=pl.BlockSpec((tile_m_eff, DIM_OUT), lambda i: (i, 0)),
        compiler_params=pltpu.CompilerParams(
            dimension_semantics=("parallel",),
            vmem_limit_bytes=32 * 1024 * 1024,
        ),
        cost_estimate=pl.CostEstimate(
            flops=flops, transcendentals=0, bytes_accessed=bytes_accessed),
    )(x, *flat)

    return out


# ------------------------------ pure-JAX reference ---------------------------
def verytiny_nerf_reference(x, params):
    relu = lambda v: jnp.maximum(v, 0.0)
    h = relu(x @ params[0][0] + params[0][1])
    h = relu(h @ params[1][0] + params[1][1])
    return h @ params[2][0] + params[2][1]


def verytiny_nerf_reference_quantized(x, params):
    # Models the kernel's numerics exactly: bf16 inputs/weights/activations,
    # f32 accumulation and f32 bias-add/ReLU.
    q = lambda a: a.astype(jnp.bfloat16).astype(jnp.float32)
    h = q(x)
    h = jnp.maximum(h @ q(params[0][0]) + params[0][1], 0.0)
    h = jnp.maximum(q(h) @ q(params[1][0]) + params[1][1], 0.0)
    return q(h) @ q(params[2][0]) + params[2][1]


# ------------------------------- param init ----------------------------------
def init_params(key):
    # Matches torch.nn.Linear default init: U(-1/sqrt(fan_in), 1/sqrt(fan_in)).
    params = []
    for fan_in, fan_out in LINEAR_DIMS:
        key, kw, kb = jax.random.split(key, 3)
        bound = 1.0 / np.sqrt(fan_in)
        w = jax.random.uniform(kw, (fan_in, fan_out), jnp.float32, -bound, bound)
        b = jax.random.uniform(kb, (1, fan_out), jnp.float32, -bound, bound)
        params.append((w, b))
    return params


if __name__ == "__main__":
    key = jax.random.PRNGKey(0)
    key, kp, kx = jax.random.split(key, 3)

    params = init_params(kp)

    # Small test batch; not a multiple of the effective tile, so it exercises
    # both the >=2-step grid cap and the masked partial trailing block.
    N = 600
    x = jax.random.normal(kx, (N, DIM_IN), jnp.float32)

    out = verytiny_nerf_forward(x, params)
    out = jax.block_until_ready(out)

    ref = verytiny_nerf_reference_quantized(x, params)
    np.testing.assert_allclose(np.asarray(out), np.asarray(ref),
                               rtol=2e-2, atol=2e-2)

    assert out.shape == (N, DIM_OUT)
    print("KERNEL_OK")
</pallas_src>

<mosaic_0001>
module attributes {stable_mosaic.version = 11 : i64} {
  func.func @_verytiny_nerf_kernel(%arg0: i32, %arg1: memref<304x78xf32, #tpu.memory_space<vmem>>, %arg2: memref<78x128xbf16, #tpu.memory_space<vmem>>, %arg3: memref<1x128xf32, #tpu.memory_space<vmem>>, %arg4: memref<128x128xbf16, #tpu.memory_space<vmem>>, %arg5: memref<1x128xf32, #tpu.memory_space<vmem>>, %arg6: memref<128x4xbf16, #tpu.memory_space<vmem>>, %arg7: memref<1x4xf32, #tpu.memory_space<vmem>>, %arg8: memref<304x4xf32, #tpu.memory_space<vmem>>) attributes {dimension_semantics = [#tpu.dimension_semantics<parallel>], iteration_bounds = array<i64: 2>, scalar_prefetch = 0 : i64, scratch_operands = 0 : i64, tpu.core_type = #tpu.core_type<tc>, window_params = [{transform_indices = @transform_0, window_bounds = array<i64: 304, 78>}, {pipeline_mode = #tpu.pipeline_mode<synchronous>, transform_indices = @transform_1, window_bounds = array<i64: 78, 128>}, {pipeline_mode = #tpu.pipeline_mode<synchronous>, transform_indices = @transform_2, window_bounds = array<i64: 1, 128>}, {pipeline_mode = #tpu.pipeline_mode<synchronous>, transform_indices = @transform_3, window_bounds = array<i64: 128, 128>}, {pipeline_mode = #tpu.pipeline_mode<synchronous>, transform_indices = @transform_4, window_bounds = array<i64: 1, 128>}, {pipeline_mode = #tpu.pipeline_mode<synchronous>, transform_indices = @transform_5, window_bounds = array<i64: 128, 4>}, {pipeline_mode = #tpu.pipeline_mode<synchronous>, transform_indices = @transform_6, window_bounds = array<i64: 1, 4>}, {transform_indices = @transform_7, window_bounds = array<i64: 304, 4>}]} {
    %c0 = arith.constant 0 : index
    %c0_0 = arith.constant 0 : index
    %0 = vector.load %arg1[%c0, %c0_0] : memref<304x78xf32, #tpu.memory_space<vmem>>, vector<304x78xf32>
    %1 = arith.truncf %0 : vector<304x78xf32> to vector<304x78xbf16>
    %c0_1 = arith.constant 0 : index
    %c0_2 = arith.constant 0 : index
    %2 = vector.load %arg2[%c0_1, %c0_2] : memref<78x128xbf16, #tpu.memory_space<vmem>>, vector<78x128xbf16>
    %cst = arith.constant dense<0.000000e+00> : vector<304x128xf32>
    %3 = tpu.matmul %1, %2, %cst {dimension_numbers = #tpu.dot_dimension_numbers<[1], [0], [0], [1], [0, 0, 1, 1], [], []>} : vector<304x78xbf16>, vector<78x128xbf16>, vector<304x128xf32> -> vector<304x128xf32>
    %c0_3 = arith.constant 0 : index
    %c0_4 = arith.constant 0 : index
    %4 = vector.load %arg3[%c0_3, %c0_4] : memref<1x128xf32, #tpu.memory_space<vmem>>, vector<1x128xf32>
    %5 = vector.broadcast %4 : vector<1x128xf32> to vector<304x128xf32>
    %6 = arith.addf %3, %5 : vector<304x128xf32>
    %cst_5 = arith.constant 0.000000e+00 : f32
    %7 = vector.broadcast %cst_5 : f32 to vector<304x128xf32>
    %8 = arith.maximumf %6, %7 : vector<304x128xf32>
    %9 = arith.truncf %8 : vector<304x128xf32> to vector<304x128xbf16>
    %c0_6 = arith.constant 0 : index
    %c0_7 = arith.constant 0 : index
    %10 = vector.load %arg4[%c0_6, %c0_7] : memref<128x128xbf16, #tpu.memory_space<vmem>>, vector<128x128xbf16>
    %cst_8 = arith.constant dense<0.000000e+00> : vector<304x128xf32>
    %11 = tpu.matmul %9, %10, %cst_8 {dimension_numbers = #tpu.dot_dimension_numbers<[1], [0], [0], [1], [0, 0, 1, 1], [], []>} : vector<304x128xbf16>, vector<128x128xbf16>, vector<304x128xf32> -> vector<304x128xf32>
    %c0_9 = arith.constant 0 : index
    %c0_10 = arith.constant 0 : index
    %12 = vector.load %arg5[%c0_9, %c0_10] : memref<1x128xf32, #tpu.memory_space<vmem>>, vector<1x128xf32>
    %13 = vector.broadcast %12 : vector<1x128xf32> to vector<304x128xf32>
    %14 = arith.addf %11, %13 : vector<304x128xf32>
    %cst_11 = arith.constant 0.000000e+00 : f32
    %15 = vector.broadcast %cst_11 : f32 to vector<304x128xf32>
    %16 = arith.maximumf %14, %15 : vector<304x128xf32>
    %17 = arith.truncf %16 : vector<304x128xf32> to vector<304x128xbf16>
    %c0_12 = arith.constant 0 : index
    %c0_13 = arith.constant 0 : index
    %18 = vector.load %arg6[%c0_12, %c0_13] : memref<128x4xbf16, #tpu.memory_space<vmem>>, vector<128x4xbf16>
    %cst_14 = arith.constant dense<0.000000e+00> : vector<304x4xf32>
    %19 = tpu.matmul %17, %18, %cst_14 {dimension_numbers = #tpu.dot_dimension_numbers<[1], [0], [0], [1], [0, 0, 1, 1], [], []>} : vector<304x128xbf16>, vector<128x4xbf16>, vector<304x4xf32> -> vector<304x4xf32>
    %c0_15 = arith.constant 0 : index
    %c0_16 = arith.constant 0 : index
    %20 = vector.load %arg7[%c0_15, %c0_16] : memref<1x4xf32, #tpu.memory_space<vmem>>, vector<1x4xf32>
    %21 = vector.broadcast %20 : vector<1x4xf32> to vector<304x4xf32>
    %22 = arith.addf %19, %21 : vector<304x4xf32>
    %c0_17 = arith.constant 0 : index
    %c0_18 = arith.constant 0 : index
    %23 = vector.load %arg8[%c0_17, %c0_18] : memref<304x4xf32, #tpu.memory_space<vmem>>, vector<304x4xf32>
    tpu.vector_store %arg8[%c0_17, %c0_18], %22 {strides = array<i32>} : memref<304x4xf32, #tpu.memory_space<vmem>>, vector<304x4xf32>,
    return
  }
  func.func @transform_0(%arg0: i32) -> (i32, i32) {
    %c0_i32 = arith.constant 0 : i32
    %c0_i32_0 = arith.constant 0 : i32
    return %arg0, %c0_i32 : i32, i32
  }
  func.func @transform_1(%arg0: i32) -> (i32, i32) {
    %c0_i32 = arith.constant 0 : i32
    %c0_i32_0 = arith.constant 0 : i32
    %c0_i32_1 = arith.constant 0 : i32
    return %c0_i32, %c0_i32_0 : i32, i32
  }
  func.func @transform_2(%arg0: i32) -> (i32, i32) {
    %c0_i32 = arith.constant 0 : i32
    %c0_i32_0 = arith.constant 0 : i32
    %c0_i32_1 = arith.constant 0 : i32
    return %c0_i32, %c0_i32_0 : i32, i32
  }
  func.func @transform_3(%arg0: i32) -> (i32, i32) {
    %c0_i32 = arith.constant 0 : i32
    %c0_i32_0 = arith.constant 0 : i32
    %c0_i32_1 = arith.constant 0 : i32
    return %c0_i32, %c0_i32_0 : i32, i32
  }
  func.func @transform_4(%arg0: i32) -> (i32, i32) {
    %c0_i32 = arith.constant 0 : i32
    %c0_i32_0 = arith.constant 0 : i32
    %c0_i32_1 = arith.constant 0 : i32
    return %c0_i32, %c0_i32_0 : i32, i32
  }
  func.func @transform_5(%arg0: i32) -> (i32, i32) {
    %c0_i32 = arith.constant 0 : i32
    %c0_i32_0 = arith.constant 0 : i32
    %c0_i32_1 = arith.constant 0 : i32
    return %c0_i32, %c0_i32_0 : i32, i32
  }
  func.func @transform_6(%arg0: i32) -> (i32, i32) {
    %c0_i32 = arith.constant 0 : i32
    %c0_i32_0 = arith.constant 0 : i32
    %c0_i32_1 = arith.constant 0 : i32
    return %c0_i32, %c0_i32_0 : i32, i32
  }
  func.func @transform_7(%arg0: i32) -> (i32, i32) {
    %c0_i32 = arith.constant 0 : i32
    %c0_i32_0 = arith.constant 0 : i32
    return %arg0, %c0_i32 : i32, i32
  }
}

</mosaic_0001>

<bundles_post_ra>
// kernel: verytiny_nerf_forward.1
= control target key start
LH: loop header
LB: loop body
LE: loop exit
PB: predicated region body
PF: predicated region fallthrough
CT: control target
= control target key end

     0   :  { %s2347_s24 = smov 0   ;;  %s2349_s25 = smov 0   ;;  %s3024_s0 = inlined_call_operand.vmem [shape: f32[600,78], index: 0, kind: input, shape index: {}]   ;;  %s3025_s1 = inlined_call_operand.vmem [shape: bf16[78,128], index: 1, kind: input, shape index: {}]   ;;  %s3026_s2 = inlined_call_operand.vmem [shape: f32[1,128], index: 2, kind: input, shape index: {}]   ;;  %s3027_s3 = inlined_call_operand.vmem [shape: bf16[128,128], index: 3, kind: input, shape index: {}]   ;;  %s3028_s4 = inlined_call_operand.vmem [shape: f32[1,128], index: 4, kind: input, shape index: {}]   ;;  %s3029_s5 = inlined_call_operand.vmem [shape: bf16[128,4], index: 5, kind: input, shape index: {}]   ;;  %s3030_s6 = inlined_call_operand.vmem [shape: f32[1,4], index: 6, kind: input, shape index: {}]   ;;  %s3031_s7 = inlined_call_operand.vmem [shape: f32[600,4], index: 7, kind: output, shape index: {}]  }
   0x1   :  { %s2351_s26 = smov 0  }
   0x2 LB: > { %s2360_s27 = sadd.s32 4294967295, %s2271_s26   ;;  %s2362_s28 = sadd.s32 1, %s2271_s26   ;;  %s2271_s26 = sphi %s2351_s26, %s3040_s26   ;;  %s2267_s25 = sphi %s2349_s25, %s3039_s25   ;;  %s2263_s24 = sphi %s2347_s24, %s3038_s24  }
   0x3   : > { %s173_s29 = ssub.s32 %s2271_s26, %s2362_s28  ;;  %s176_s30 = sadd.s32 1, %s2267_s25 }
   0x4   : > { %p174_p0 = scmp.eq.s32.totalorder %s173_s29, 0  ;;  %p186_p1 = scmp.ne.s32.totalorder %s2267_s25, %s2263_s24 }
   0x5   : > { %p187_p2 = scmp.eq.s32.totalorder %s2360_s27, 1  ;;  %p1684_p3 = scmp.ge.s32.totalorder %s2271_s26, 1 }
   0x6   : > { %s2370_s8 = scalar_select %p174_p0, %s2267_s25, %s176_s30  }
   0x7   : > { %p2372_p4 = por %p187_p2, %p186_p1  ;;  %p246_p5 = scmp.lt.s32.totalorder %s2271_s26, 3 }
   0x9   : > { %p247_p6 = pnand %p1684_p3, %p246_p5 }
   0xa   : > { %v2192_v0 = vld [vmem:[%s3025_s1] sm:$0xff] (!%p247_p6)   ;;  %v2305_v1 = vmov (!%p247_p6), 0.0   ;;  %v2193_v2 = vld [vmem:[%s3025_s1 + $0x8] sm:$0xff] (!%p247_p6)   ;;  %vm2306_vm0 = vmmov (!%p247_p6), 0   ;;  %s2388_s14 = smul.u32 (!%p247_p6), 38, %s2360_s27  ;;  %v2194_v3 = vld [vmem:[%s3025_s1 + $0x10] sm:$0xff] (!%p247_p6)  }
   0xb   : > { %250 = sbr.rel (%p247_p6) target bundleno = 903 (0x387), region = 48  ;;  %1820 = vmatprep.subr.bf16.mxu0 (!%p247_p6), %v2305_v1  ;;  %2090 = vmatprep.subr.bf16.mxu1 (!%p247_p6), %v2305_v1  ;;  %v2195_v4 = vld [vmem:[%s3025_s1 + $0x18] sm:$0xff] (!%p247_p6)   ;;  %v2196_v5 = vld [vmem:[%s3025_s1 + $0x20] sm:$0x7f] (!%p247_p6)   ;;  %vm462_vm1 = vcmask (!%p247_p6), 1046528   ;;  %vm404_vm2 = vcmask (!%p247_p6), 637952  }
   0xc   : > { %1821 = vmatpush3.bf16.msra.mxu0 (!%p247_p6), %v2192_v0  ;;  %2095 = vmatpush3.bf16.msra.mxu1 (!%p247_p6), %v2192_v0  ;;  %p286_p7 = scmp.lt.s32.totalorder (!%p247_p6), %s2388_s14, 74  ;;  %v464_v8 = vsel (!%p247_p6), %vm462_vm1, %v2196_v5, 0  ;;  %v2197_v13 = vld [vmem:[%s3027_s3] sm:$0xff] (!%p247_p6)   ;;  %v2198_v18 = vld [vmem:[%s3027_s3 + $0x8] sm:$0xff] (!%p247_p6)   ;;  %v2199_v21 = vld [vmem:[%s3027_s3 + $0x10] sm:$0xff] (!%p247_p6)   ;;  %s278_s13 = sand.u32 (!%p247_p6), 1, %s2263_s24  }
   0xd   : > { %1822 = vmatprep.subr.bf16.mxu0 (!%p247_p6), %v2305_v1  ;;  %1830 = vmatprep.mubr.msk.bf16.mxu0 (!%p247_p6), %vm2306_vm0, %v2305_v1  ;;  %v2200_v26 = vld [vmem:[%s3027_s3 + $0x18] sm:$0xff] (!%p247_p6)   ;;  %v2201_v29 = vld [vmem:[%s3027_s3 + $0x20] sm:$0xff] (!%p247_p6)   ;;  %v2202_v34 = vld [vmem:[%s3027_s3 + $0x28] sm:$0xff] (!%p247_p6)   ;;  %s2100_s15 = smul.u32 (!%p247_p6), 304, %s278_s13  ;;  %vm1277_vm3 = vcmask (!%p247_p6), 31744  }
   0xe   : > { %2091 = vmatprep.subr.bf16.mxu1 (!%p247_p6), %v2305_v1  ;;  %1870 = vmatprep.mubr.msk.bf16.mxu1 (!%p247_p6), %vm2306_vm0, %v2305_v1  ;;  %v2203_v37 = vld [vmem:[%s3027_s3 + $0x30] sm:$0xff] (!%p247_p6)  }
  0x10   : > { %1823 = vmatpush3.bf16.msra.mxu0 (!%p247_p6), %v2193_v2  ;;  %2096 = vmatpush3.bf16.msra.mxu1 (!%p247_p6), %v2193_v2 }
  0x11   : > { %1824 = vmatprep.subr.bf16.mxu0 (!%p247_p6), %v2305_v1  ;;  %2092 = vmatprep.subr.bf16.mxu1 (!%p247_p6), %v2305_v1 }
  0x12   : > { %s287_s17 = scalar_select %p286_p7, %s2388_s14, 74 }
  0x13   : > { %s1324_s24 = ssub.s32 (%p2372_p4), 75, %s2388_s14  ;;  %s1741_s19 = smul.u32 (%p2372_p4), 304, %s2360_s27 }
  0x14   : > { %s1685_s18 = sshll.u32 %s287_s17, 3  ;;  %1825 = vmatpush3.bf16.msra.mxu0 %v2194_v3  ;;  %2097 = vmatpush3.bf16.msra.mxu1 %v2194_v3  ;;  %p1325_p8 = scmp.lt.s32.totalorder (%p2372_p4), %s1324_s24, 38 }
  0x15   : > { %1826 = vmatprep.subr.bf16.mxu0 %v2305_v1  ;;  %s2410_s29 = scalar_lea.vmem %s3024_s0, %s1685_s18  ;;  %2093 = vmatprep.subr.bf16.mxu1 %v2305_v1  ;;  %s2760_s18 = scalar_lea.vmem [#allocation2], %s2100_s15  }
  0x16   : > { %v301_v6 = vld [vmem:[%s2410_s29] sm:$0xff]  ;;  %v302_v7 = vld [vmem:[%s2410_s29 + $0x8] sm:$0xff]  ;;  %v303_v14 = vld [vmem:[%s2410_s29 + $0x10] sm:$0xff]  ;;  %s2882_s22 = scalar_lea.vmem (%p2372_p4), %s3031_s7, %s1741_s19  }
  0x17   : > { %v339_v9 = vpack.c.bf16 %v302_v7, %v301_v6  ;;  %v321_v10 = vld [vmem:[%s2410_s29 + $0xa0] sm:$0xff]  ;;  %v322_v11 = vld [vmem:[%s2410_s29 + $0xa8] sm:$0xff]  ;;  %v304_v15 = vld [vmem:[%s2410_s29 + $0x18] sm:$0xff] }
  0x18   : > { %1827 = vmatpush3.bf16.msra.mxu0 %v2195_v4  ;;  %2098 = vmatpush3.bf16.msra.mxu1 %v2195_v4  ;;  %v349_v12 = vpack.c.bf16 %v322_v11, %v321_v10  ;;  %v323_v16 = vld [vmem:[%s2410_s29 + $0xb0] sm:$0xff]  ;;  %v324_v17 = vld [vmem:[%s2410_s29 + $0xb8] sm:$0xff]  ;;  %v340_v19 = vpack.c.bf16 %v304_v15, %v303_v14  ;;  %v305_v22 = vld [vmem:[%s2410_s29 + $0x20] sm:$0xff] }
  0x19   : > { %1828 = vmatprep.subr.bf16.mxu0 %v2305_v1  ;;  %2094 = vmatprep.subr.bf16.mxu1 %v2305_v1  ;;  %v350_v20 = vpack.c.bf16 %v324_v17, %v323_v16  ;;  %v306_v23 = vld [vmem:[%s2410_s29 + $0x28] sm:$0xff]  ;;  %v325_v24 = vld [vmem:[%s2410_s29 + $0xc0] sm:$0xff]  ;;  %v307_v30 = vld [vmem:[%s2410_s29 + $0x30] sm:$0xff] }
  0x1a   : > { %v326_v25 = vld [vmem:[%s2410_s29 + $0xc8] sm:$0xff]  ;;  %v341_v27 = vpack.c.bf16 %v306_v23, %v305_v22  ;;  %v308_v31 = vld [vmem:[%s2410_s29 + $0x38] sm:$0xff]  ;;  %v327_v32 = vld [vmem:[%s2410_s29 + $0xd0] sm:$0xff] }
  0x1b   : > { %v351_v28 = vpack.c.bf16 %v326_v25, %v325_v24  ;;  %v328_v33 = vld [vmem:[%s2410_s29 + $0xd8] sm:$0xff]  ;;  %v342_v35 = vpack.c.bf16 %v308_v31, %v307_v30  ;;  %v309_v38 = vld [vmem:[%s2410_s29 + $0x40] sm:$0xff]  ;;  %v310_v39 = vld [vmem:[%s2410_s29 + $0x48] sm:$0xff] }
  0x1c   : > { %1829 = vmatpush3.bf16.msra.mxu0 %v464_v8  ;;  %2099 = vmatpush3.bf16.msra.mxu1 %v464_v8  ;;  %v352_v36 = vpack.c.bf16 %v328_v33, %v327_v32  ;;  %v329_v40 = vld [vmem:[%s2410_s29 + $0xe0] sm:$0xff]  ;;  %v330_v41 = vld [vmem:[%s2410_s29 + $0xe8] sm:$0xff]  ;;  %v343_v42 = vpack.c.bf16 %v310_v39, %v309_v38  ;;  %v311_v44 = vld [vmem:[%s2410_s29 + $0x50] sm:$0xff] }
  0x1d   : > { %1906 = vmatprep.subr.bf16.mxu1 %v2305_v1  ;;  %1998 = vmatprep.subr.bf16.mxu0 %v2305_v1  ;;  %v353_v43 = vpack.c.bf16 %v330_v41, %v329_v40  ;;  %v312_v45 = vld [vmem:[%s2410_s29 + $0x58] sm:$0xff]  ;;  %v331_v46 = vld [vmem:[%s2410_s29 + $0xf0] sm:$0xff]  ;;  %v313_v50 = vld [vmem:[%s2410_s29 + $0x60] sm:$0xff] }
  0x1e   : > { %v332_v47 = vld [vmem:[%s2410_s29 + $0xf8] sm:$0xff]  ;;  %v344_v48 = vpack.c.bf16 %v312_v45, %v311_v44  ;;  %v314_v51 = vld [vmem:[%s2410_s29 + $0x68] sm:$0xff]  ;;  %v333_v52 = vld [vmem:[%s2410_s29 + $0x100] sm:$0xff] }
  0x1f   : > { %1831 = vmatmul.mubr.msk.bf16.vlgmr.msra.gmra.mrb[0].mxu0 %vm404_vm2, %v339_v9  ;;  %1871 = vmatmul.mubr.msk.bf16.vlgmr.msra.gmra.mrb[0].mxu1 %vm404_vm2, %v349_v12  ;;  %v354_v49 = vpack.c.bf16 %v332_v47, %v331_v46  ;;  %v334_v53 = vld [vmem:[%s2410_s29 + $0x108] sm:$0xff]  ;;  %v345_v54 = vpack.c.bf16 %v314_v51, %v313_v50  ;;  %v315_v56 = vld [vmem:[%s2410_s29 + $0x70] sm:$0xff]  ;;  %v316_v57 = vld [vmem:[%s2410_s29 + $0x78] sm:$0xff] }
  0x20   : > { %1834 = vmatprep.mubr.msk.bf16.mxu0 %vm2306_vm0, %v2305_v1  ;;  %1874 = vmatprep.mubr.msk.bf16.mxu1 %vm2306_vm0, %v2305_v1  ;;  %v355_v55 = vpack.c.bf16 %v334_v53, %v333_v52  ;;  %v335_v58 = vld [vmem:[%s2410_s29 + $0x110] sm:$0xff]  ;;  %v336_v59 = vld [vmem:[%s2410_s29 + $0x118] sm:$0xff]  ;;  %v346_v60 = vpack.c.bf16 %v316_v57, %v315_v56  ;;  %v317_v62 = vld [vmem:[%s2410_s29 + $0x80] sm:$0xff] }
  0x21   : > { %1907 = vmatpush3.bf16.msra.mxu1 %v2197_v13  ;;  %v356_v61 = vpack.c.bf16 %v336_v59, %v335_v58  ;;  %v318_v63 = vld [vmem:[%s2410_s29 + $0x88] sm:$0xff]  ;;  %v337_v0 = vld [vmem:[%s2410_s29 + $0x120] sm:$0xff]  ;;  %v319_v5 = vld [vmem:[%s2410_s29 + $0x90] sm:$0xff] }
  0x22   : > { %1908 = vmatprep.subr.bf16.mxu1 %v2305_v1  ;;  %v338_v2 = vld [vmem:[%s2410_s29 + $0x128] sm:$0xff]  ;;  %v347_v3 = vpack.c.bf16 %v318_v63, %v317_v62  ;;  %v320_v6 = vld [vmem:[%s2410_s29 + $0x98] sm:$0xff]  ;;  %v2546_v9 = vld [vmem:[%s3026_s2] ss:$0 sm:$0xff] }
  0x23   : > { %v357_v4 = vpack.c.bf16 %v338_v2, %v337_v0  ;;  %v348_v7 = vpack.c.bf16 %v320_v6, %v319_v5  ;;  %v2204_v8 = vld [vmem:[%s3027_s3 + $0x38] sm:$0xff]   ;;  %v2205_v52 = vld [vmem:[%s3029_s5] sm:$0xff]  }
  0x24   : > { %1999 = vmatpush3.bf16.msra.mxu0 %v2205_v52 }
  0x25   : > { %1909 = vmatpush3.bf16.msra.mxu1 %v2198_v18  ;;  %2000 = vmatprep.subr.bf16.mxu0 %v2305_v1 }
  0x26   : > { %1910 = vmatprep.subr.bf16.mxu1 %v2305_v1 }
  0x27   : > { %1835 = vmatmul.mubr.msk.bf16.gmra.mrb[4].mxu0 %vm404_vm2, %v340_v19  ;;  %1875 = vmatmul.mubr.msk.bf16.gmra.mrb[4].mxu1 %vm404_vm2, %v350_v20 }
  0x28   : > { %1838 = vmatprep.mubr.msk.bf16.mxu0 %vm2306_vm0, %v2305_v1  ;;  %1878 = vmatprep.mubr.msk.bf16.mxu1 %vm2306_vm0, %v2305_v1 }
  0x29   : > { %1911 = vmatpush3.bf16.msra.mxu1 %v2199_v21 }
  0x2a   : > { %1912 = vmatprep.subr.bf16.mxu1 %v2305_v1 }
  0x2d   : > { %1913 = vmatpush3.bf16.msra.mxu1 %v2200_v26 }
  0x2e   : > { %1914 = vmatprep.subr.bf16.mxu1 %v2305_v1 }
  0x2f   : > { %1839 = vmatmul.mubr.msk.bf16.gmra.mrb[8].mxu0 %vm404_vm2, %v341_v27  ;;  %1879 = vmatmul.mubr.msk.bf16.gmra.mrb[8].mxu1 %vm404_vm2, %v351_v28 }
  0x30   : > { %1842 = vmatprep.mubr.msk.bf16.mxu0 %vm2306_vm0, %v2305_v1  ;;  %1882 = vmatprep.mubr.msk.bf16.mxu1 %vm2306_vm0, %v2305_v1 }
  0x31   : > { %1915 = vmatpush3.bf16.msra.mxu1 %v2201_v29 }
  0x32   : > { %1916 = vmatprep.subr.bf16.mxu1 %v2305_v1 }
  0x35   : > { %1917 = vmatpush3.bf16.msra.mxu1 %v2202_v34 }
  0x36   : > { %1918 = vmatprep.subr.bf16.mxu1 %v2305_v1 }
  0x37   : > { %1843 = vmatmul.mubr.msk.bf16.gmra.mrb[12].mxu0 %vm404_vm2, %v342_v35  ;;  %1883 = vmatmul.mubr.msk.bf16.gmra.mrb[12].mxu1 %vm404_vm2, %v352_v36 }
  0x38   : > { %1846 = vmatprep.mubr.msk.bf16.mxu0 %vm2306_vm0, %v2305_v1  ;;  %1886 = vmatprep.mubr.msk.bf16.mxu1 %vm2306_vm0, %v2305_v1 }
  0x39   : > { %1919 = vmatpush3.bf16.msra.mxu1 %v2203_v37 }
  0x3a   : > { %1920 = vmatprep.subr.bf16.mxu1 %v2305_v1 }
  0x3d   : > { %1921 = vmatpush3.bf16.msra.mxu1 %v2204_v8  ;;  %v2206_v8 = vld [vmem:[%s3029_s5 + $0x8] sm:$0xff]  }
  0x3e   : > { %2001 = vmatpush3.bf16.msra.mxu0 %v2206_v8 }
  0x3f   : > { %1847 = vmatmul.mubr.msk.bf16.gmra.mrb[16].mxu0 %vm404_vm2, %v343_v42  ;;  %1887 = vmatmul.mubr.msk.bf16.gmra.mrb[16].mxu1 %vm404_vm2, %v353_v43 }
  0x40   : > { %1850 = vmatprep.mubr.msk.bf16.mxu0 %vm2306_vm0, %v2305_v1  ;;  %1890 = vmatprep.mubr.msk.bf16.mxu1 %vm2306_vm0, %v2305_v1 }
  0x41   : > { %2002 = vmatprep.subr.bf16.mxu0 %v2305_v1 }
  0x47   : > { %1851 = vmatmul.mubr.msk.bf16.gmra.mrb[20].mxu0 %vm404_vm2, %v344_v48  ;;  %1891 = vmatmul.mubr.msk.bf16.gmra.mrb[20].mxu1 %vm404_vm2, %v354_v49 }
  0x48   : > { %1854 = vmatprep.mubr.msk.bf16.mxu0 %vm2306_vm0, %v2305_v1  ;;  %1894 = vmatprep.mubr.msk.bf16.mxu1 %vm2306_vm0, %v2305_v1 }
  0x4f   : > { %1855 = vmatmul.mubr.msk.bf16.gmra.mrb[24].mxu0 %vm404_vm2, %v345_v54  ;;  %1895 = vmatmul.mubr.msk.bf16.gmra.mrb[24].mxu1 %vm404_vm2, %v355_v55 }
  0x50   : > { %1858 = vmatprep.mubr.msk.bf16.mxu0 %vm2306_vm0, %v2305_v1  ;;  %1898 = vmatprep.mubr.msk.bf16.mxu1 %vm2306_vm0, %v2305_v1 }
  0x57   : > { %1859 = vmatmul.mubr.msk.bf16.gmra.mrb[28].mxu0 %vm404_vm2, %v346_v60  ;;  %1899 = vmatmul.mubr.msk.bf16.gmra.mrb[28].mxu1 %vm404_vm2, %v356_v61 }
  0x58   : > { %1862 = vmatprep.mubr.msk.bf16.mxu0 %vm2306_vm0, %v2305_v1  ;;  %1902 = vmatprep.mubr.msk.bf16.mxu1 %vm2306_vm0, %v2305_v1 }
  0x5f   : > { %1863 = vmatmul.mubr.msk.bf16.gmra.mrb[32].mxu0 %vm404_vm2, %v347_v3  ;;  %1903 = vmatmul.mubr.msk.bf16.gmra.mrb[32].mxu1 %vm404_vm2, %v357_v4 }
  0x60   : > { %1866 = vmatprep.mubr.msk.bf16.mxu0 %vm2306_vm0, %v2305_v1  ;;  %1922 = vmatprep.mubr.msk.bf16.mxu1 %vm2306_vm0, %v2305_v1 }
  0x67   : > { %1867 = vmatmul.mubr.msk.bf16.gmra.mrb[36].mxu0 %vm404_vm2, %v348_v7 }
  0x68   : > { %2014 = vmatprep.mubr.msk.bf16.mxu0 %vm2306_vm0, %v2305_v1 }
  0xf2   : > { %v500_v10 = vpop.f32.mrb[0].mxu0  ;;  %v580_v11 = vpop.f32.mrb[0].mxu1 }
  0xf3   : > { %v501_v12 = vadd.f32 %v2546_v9, %v500_v10  ;;  %v1832_v13 = vpop.f32.mrb[1].mxu0  ;;  %v581_v14 = vadd.f32 %v2546_v9, %v580_v11  ;;  %v1872_v15 = vpop.f32.mrb[1].mxu1 }
  0xf4   : > { %v503_v16 = vpop.f32.mrb[2].mxu0  ;;  %v583_v17 = vpop.f32.mrb[2].mxu1 }
  0xf5   : > { %v504_v18 = vadd.f32 %v2546_v9, %v503_v16  ;;  %v1833_v19 = vpop.f32.mrb[3].mxu0  ;;  %v671_v20 = vmax.f32 %v581_v14, 0.0  ;;  %v584_v21 = vadd.f32 %v2546_v9, %v583_v17  ;;  %v1873_v22 = vpop.f32.mrb[3].mxu1  ;;  %v651_v23 = vmax.f32 %v501_v12, 0.0  ;;  %v2207_v17 = vld [vmem:[%s3029_s5 + $0x10] sm:$0xff]  }
  0xf6   : > { %2003 = vmatpush3.bf16.msra.mxu0 %v2207_v17 }
  0xf7   : > { %v652_v24 = vmax.f32 %v504_v18, 0.0  ;;  %v672_v25 = vmax.f32 %v584_v21, 0.0  ;;  %2004 = vmatprep.subr.bf16.mxu0 %v2305_v1 }
  0xf9   : > { %v689_v26 = vpack.c.bf16 %v652_v24, %v651_v23  ;;  %v2552_v27 = vpack.c.bf16 %v672_v25, %v671_v20  ;;  %v2208_v23 = vld [vmem:[%s3029_s5 + $0x18] sm:$0xff]  }
  0xfa   : > { %v508_v28 = vpop.f32.mrb[4].mxu0  ;;  %v588_v29 = vpop.f32.mrb[4].mxu1  ;;  %2005 = vmatpush3.bf16.msra.mxu0 %v2208_v23 }
  0xfb   : > { %v509_v30 = vadd.f32 %v2546_v9, %v508_v28  ;;  %v1836_v31 = vpop.f32.mrb[5].mxu0  ;;  %1923 = vmatmul.mubr.bf16.vlgmr.msra.gmra.mrb[36].mxu1 %v689_v26  ;;  %v589_v32 = vadd.f32 %v2546_v9, %v588_v29  ;;  %v1876_v33 = vpop.f32.mrb[5].mxu1  ;;  %2006 = vmatprep.subr.bf16.mxu0 %v2305_v1 }
  0xfc   : > { %v511_v34 = vpop.f32.mrb[6].mxu0  ;;  %1926 = vmatprep.mubr.msk.bf16.mxu1 %vm2306_vm0, %v2305_v1  ;;  %v591_v35 = vpop.f32.mrb[6].mxu1 }
  0xfd   : > { %v512_v36 = vadd.f32 %v2546_v9, %v511_v34  ;;  %v1837_v37 = vpop.f32.mrb[7].mxu0  ;;  %v673_v38 = vmax.f32 %v589_v32, 0.0  ;;  %v592_v39 = vadd.f32 %v2546_v9, %v591_v35  ;;  %v1877_v40 = vpop.f32.mrb[7].mxu1  ;;  %v653_v41 = vmax.f32 %v509_v30, 0.0 }
  0xff   : > { %v654_v42 = vmax.f32 %v512_v36, 0.0  ;;  %v674_v43 = vmax.f32 %v592_v39, 0.0 }
 0x101   : > { %v690_v44 = vpack.c.bf16 %v654_v42, %v653_v41  ;;  %v2560_v45 = vpack.c.bf16 %v674_v43, %v673_v38  ;;  %v2209_v38 = vld [vmem:[%s3029_s5 + $0x20] sm:$0xff]  }
 0x102   : > { %v516_v46 = vpop.f32.mrb[8].mxu0  ;;  %v596_v47 = vpop.f32.mrb[8].mxu1  ;;  %2007 = vmatpush3.bf16.msra.mxu0 %v2209_v38 }
 0x103   : > { %v517_v48 = vadd.f32 %v2546_v9, %v516_v46  ;;  %v1840_v49 = vpop.f32.mrb[9].mxu0  ;;  %1927 = vmatmul.mubr.bf16.gmra.mrb[40].mxu1 %v690_v44  ;;  %v597_v50 = vadd.f32 %v2546_v9, %v596_v47  ;;  %v1880_v51 = vpop.f32.mrb[9].mxu1  ;;  %v2210_v44 = vld [vmem:[%s3029_s5 + $0x28] sm:$0xff]   ;;  %2008 = vmatprep.subr.bf16.mxu0 %v2305_v1 }
 0x104   : > { %v519_v53 = vpop.f32.mrb[10].mxu0  ;;  %1930 = vmatprep.mubr.msk.bf16.mxu1 %vm2306_vm0, %v2305_v1  ;;  %v599_v54 = vpop.f32.mrb[10].mxu1 }
 0x105   : > { %v520_v55 = vadd.f32 %v2546_v9, %v519_v53  ;;  %v1841_v56 = vpop.f32.mrb[11].mxu0  ;;  %v675_v57 = vmax.f32 %v597_v50, 0.0  ;;  %v600_v58 = vadd.f32 %v2546_v9, %v599_v54  ;;  %v1881_v59 = vpop.f32.mrb[11].mxu1  ;;  %v655_v60 = vmax.f32 %v517_v48, 0.0 }
 0x106   : > { %2009 = vmatpush3.bf16.msra.mxu0 %v2210_v44  ;;  %v2211_v59 = vld [vmem:[%s3029_s5 + $0x30] sm:$0xff]  }
 0x107   : > { %v656_v61 = vmax.f32 %v520_v55, 0.0  ;;  %v676_v62 = vmax.f32 %v600_v58, 0.0  ;;  %2010 = vmatprep.subr.bf16.mxu0 %v2305_v1 }
 0x109   : > { %v691_v63 = vpack.c.bf16 %v656_v61, %v655_v60  ;;  %v2572_v0 = vpack.c.bf16 %v676_v62, %v675_v57 }
 0x10a   : > { %v524_v2 = vpop.f32.mrb[12].mxu0  ;;  %v604_v3 = vpop.f32.mrb[12].mxu1  ;;  %2011 = vmatpush3.bf16.msra.mxu0 %v2211_v59 }
 0x10b   : > { %v525_v4 = vadd.f32 %v2546_v9, %v524_v2  ;;  %v1844_v5 = vpop.f32.mrb[13].mxu0  ;;  %1931 = vmatmul.mubr.bf16.gmra.mrb[44].mxu1 %v691_v63  ;;  %v605_v6 = vadd.f32 %v2546_v9, %v604_v3  ;;  %v1884_v7 = vpop.f32.mrb[13].mxu1  ;;  %v2212_v3 = vld [vmem:[%s3029_s5 + $0x38] sm:$0xff]   ;;  %2012 = vmatprep.subr.bf16.mxu0 %v2305_v1 }
 0x10c   : > { %v527_v10 = vpop.f32.mrb[14].mxu0  ;;  %1934 = vmatprep.mubr.msk.bf16.mxu1 %vm2306_vm0, %v2305_v1  ;;  %v607_v11 = vpop.f32.mrb[14].mxu1 }
 0x10d   : > { %v528_v12 = vadd.f32 %v2546_v9, %v527_v10  ;;  %v1845_v13 = vpop.f32.mrb[15].mxu0  ;;  %v677_v14 = vmax.f32 %v605_v6, 0.0  ;;  %v608_v15 = vadd.f32 %v2546_v9, %v607_v11  ;;  %v1885_v16 = vpop.f32.mrb[15].mxu1  ;;  %v657_v18 = vmax.f32 %v525_v4, 0.0 }
 0x10e   : > { %2013 = vmatpush3.bf16.msra.mxu0 %v2212_v3 }
 0x10f   : > { %v658_v19 = vmax.f32 %v528_v12, 0.0  ;;  %v678_v20 = vmax.f32 %v608_v15, 0.0 }
 0x111   : > { %v692_v21 = vpack.c.bf16 %v658_v19, %v657_v18  ;;  %v2587_v22 = vpack.c.bf16 %v678_v20, %v677_v14 }
 0x112   : > { %v532_v24 = vpop.f32.mrb[16].mxu0  ;;  %v612_v25 = vpop.f32.mrb[16].mxu1 }
 0x113   : > { %v533_v26 = vadd.f32 %v2546_v9, %v532_v24  ;;  %v1848_v28 = vpop.f32.mrb[17].mxu0  ;;  %1935 = vmatmul.mubr.bf16.gmra.mrb[48].mxu1 %v692_v21  ;;  %v613_v29 = vadd.f32 %v2546_v9, %v612_v25  ;;  %v1888_v30 = vpop.f32.mrb[17].mxu1 }
 0x114   : > { %v535_v31 = vpop.f32.mrb[18].mxu0  ;;  %1938 = vmatprep.mubr.msk.bf16.mxu1 %vm2306_vm0, %v2305_v1  ;;  %v615_v32 = vpop.f32.mrb[18].mxu1 }
 0x115   : > { %v536_v33 = vadd.f32 %v2546_v9, %v535_v31  ;;  %v1849_v34 = vpop.f32.mrb[19].mxu0  ;;  %v679_v35 = vmax.f32 %v613_v29, 0.0  ;;  %v616_v36 = vadd.f32 %v2546_v9, %v615_v32  ;;  %v1889_v37 = vpop.f32.mrb[19].mxu1  ;;  %v659_v39 = vmax.f32 %v533_v26, 0.0 }
 0x117   : > { %v660_v40 = vmax.f32 %v536_v33, 0.0  ;;  %v680_v41 = vmax.f32 %v616_v36, 0.0 }
 0x119   : > { %v693_v42 = vpack.c.bf16 %v660_v40, %v659_v39  ;;  %v2603_v43 = vpack.c.bf16 %v680_v41, %v679_v35 }
 0x11a   : > { %v540_v46 = vpop.f32.mrb[20].mxu0  ;;  %v620_v47 = vpop.f32.mrb[20].mxu1 }
 0x11b   : > { %v541_v48 = vadd.f32 %v2546_v9, %v540_v46  ;;  %v1852_v49 = vpop.f32.mrb[21].mxu0  ;;  %1939 = vmatmul.mubr.bf16.gmra.mrb[52].mxu1 %v693_v42  ;;  %v621_v50 = vadd.f32 %v2546_v9, %v620_v47  ;;  %v1892_v51 = vpop.f32.mrb[21].mxu1 }
 0x11c   : > { %v543_v52 = vpop.f32.mrb[22].mxu0  ;;  %1942 = vmatprep.mubr.msk.bf16.mxu1 %vm2306_vm0, %v2305_v1  ;;  %v623_v53 = vpop.f32.mrb[22].mxu1 }
 0x11d   : > { %v544_v54 = vadd.f32 %v2546_v9, %v543_v52  ;;  %v1853_v55 = vpop.f32.mrb[23].mxu0  ;;  %v681_v56 = vmax.f32 %v621_v50, 0.0  ;;  %v624_v57 = vadd.f32 %v2546_v9, %v623_v53  ;;  %v1893_v58 = vpop.f32.mrb[23].mxu1  ;;  %v661_v60 = vmax.f32 %v541_v48, 0.0 }
 0x11f   : > { %v662_v61 = vmax.f32 %v544_v54, 0.0  ;;  %v682_v62 = vmax.f32 %v624_v57, 0.0 }
 0x121   : > { %v694_v63 = vpack.c.bf16 %v662_v61, %v661_v60  ;;  %v2619_v2 = vpack.c.bf16 %v682_v62, %v681_v56 }
 0x122   : > { %v548_v4 = vpop.f32.mrb[24].mxu0  ;;  %v628_v5 = vpop.f32.mrb[24].mxu1 }
 0x123   : > { %v549_v6 = vadd.f32 %v2546_v9, %v548_v4  ;;  %v1856_v7 = vpop.f32.mrb[25].mxu0  ;;  %1943 = vmatmul.mubr.bf16.gmra.mrb[56].mxu1 %v694_v63  ;;  %v629_v8 = vadd.f32 %v2546_v9, %v628_v5  ;;  %v1896_v10 = vpop.f32.mrb[25].mxu1 }
 0x124   : > { %v551_v11 = vpop.f32.mrb[26].mxu0  ;;  %1946 = vmatprep.mubr.msk.bf16.mxu1 %vm2306_vm0, %v2305_v1  ;;  %v631_v12 = vpop.f32.mrb[26].mxu1 }
 0x125   : > { %v552_v13 = vadd.f32 %v2546_v9, %v551_v11  ;;  %v1857_v14 = vpop.f32.mrb[27].mxu0  ;;  %v683_v15 = vmax.f32 %v629_v8, 0.0  ;;  %v632_v16 = vadd.f32 %v2546_v9, %v631_v12  ;;  %v1897_v17 = vpop.f32.mrb[27].mxu1  ;;  %v663_v18 = vmax.f32 %v549_v6, 0.0 }
 0x127   : > { %v664_v19 = vmax.f32 %v552_v13, 0.0  ;;  %v684_v20 = vmax.f32 %v632_v16, 0.0 }
 0x129   : > { %v695_v21 = vpack.c.bf16 %v664_v19, %v663_v18  ;;  %v2631_v23 = vpack.c.bf16 %v684_v20, %v683_v15 }
 0x12a   : > { %v556_v24 = vpop.f32.mrb[28].mxu0  ;;  %v636_v25 = vpop.f32.mrb[28].mxu1 }
 0x12b   : > { %v557_v26 = vadd.f32 %v2546_v9, %v556_v24  ;;  %v1860_v28 = vpop.f32.mrb[29].mxu0  ;;  %1947 = vmatmul.mubr.bf16.gmra.mrb[60].mxu1 %v695_v21  ;;  %v637_v29 = vadd.f32 %v2546_v9, %v636_v25  ;;  %v1900_v30 = vpop.f32.mrb[29].mxu1 }
 0x12c   : > { %v559_v31 = vpop.f32.mrb[30].mxu0  ;;  %1950 = vmatprep.mubr.msk.bf16.mxu1 %vm2306_vm0, %v2305_v1  ;;  %v639_v32 = vpop.f32.mrb[30].mxu1 }
 0x12d   : > { %v560_v33 = vadd.f32 %v2546_v9, %v559_v31  ;;  %v1861_v34 = vpop.f32.mrb[31].mxu0  ;;  %v685_v35 = vmax.f32 %v637_v29, 0.0  ;;  %v640_v36 = vadd.f32 %v2546_v9, %v639_v32  ;;  %v1901_v37 = vpop.f32.mrb[31].mxu1  ;;  %v665_v38 = vmax.f32 %v557_v26, 0.0 }
 0x12f   : > { %v666_v39 = vmax.f32 %v560_v33, 0.0  ;;  %v686_v40 = vmax.f32 %v640_v36, 0.0 }
 0x131   : > { %v696_v41 = vpack.c.bf16 %v666_v39, %v665_v38  ;;  %v706_v42 = vpack.c.bf16 %v686_v40, %v685_v35 }
 0x132   : > { %v564_v44 = vpop.f32.mrb[32].mxu0  ;;  %v644_v46 = vpop.f32.mrb[32].mxu1 }
 0x133   : > { %v565_v47 = vadd.f32 %v2546_v9, %v564_v44  ;;  %v1864_v48 = vpop.f32.mrb[33].mxu0  ;;  %1951 = vmatmul.mubr.bf16.gmra.mrb[64].mxu1 %v696_v41  ;;  %v645_v49 = vadd.f32 %v2546_v9, %v644_v46  ;;  %v1904_v50 = vpop.f32.mrb[33].mxu1 }
 0x134   : > { %v567_v51 = vpop.f32.mrb[34].mxu0  ;;  %1954 = vmatprep.mubr.msk.bf16.mxu1 %vm2306_vm0, %v2305_v1  ;;  %v647_v52 = vpop.f32.mrb[34].mxu1 }
 0x135   : > { %v568_v53 = vadd.f32 %v2546_v9, %v567_v51  ;;  %v1865_v54 = vpop.f32.mrb[35].mxu0  ;;  %v687_v55 = vmax.f32 %v645_v49, 0.0  ;;  %v648_v56 = vadd.f32 %v2546_v9, %v647_v52  ;;  %v1905_v57 = vpop.f32.mrb[35].mxu1  ;;  %v667_v58 = vmax.f32 %v565_v47, 0.0 }
 0x137   : > { %v668_v59 = vmax.f32 %v568_v53, 0.0  ;;  %v688_v60 = vmax.f32 %v648_v56, 0.0 }
 0x139   : > { %v697_v61 = vpack.c.bf16 %v668_v59, %v667_v58  ;;  %v707_v62 = vpack.c.bf16 %v688_v60, %v687_v55 }
 0x13a   : > { %v572_v63 = vpop.f32.mrb[36].mxu0 }
 0x13b   : > { %v573_v3 = vadd.f32 %v2546_v9, %v572_v63  ;;  %v1868_v4 = vpop.f32.mrb[37].mxu0  ;;  %1955 = vmatmul.mubr.bf16.gmra.mrb[68].mxu1 %v697_v61 }
 0x13c   : > { %v575_v5 = vpop.f32.mrb[38].mxu0  ;;  %1958 = vmatprep.mubr.msk.bf16.mxu1 %vm2306_vm0, %v2305_v1 }
 0x13d   : > { %v576_v6 = vadd.f32 %v2546_v9, %v575_v5  ;;  %v1869_v7 = vpop.f32.mrb[39].mxu0  ;;  %v669_v8 = vmax.f32 %v573_v3, 0.0  ;;  %v2677_v9 = vld [vmem:[%s3028_s4] ss:$0 sm:$0xff] }
 0x13f   : > { %v670_v10 = vmax.f32 %v576_v6, 0.0 }
 0x141   : > { %v698_v11 = vpack.c.bf16 %v670_v10, %v669_v8 }
 0x143   : > { %1959 = vmatmul.mubr.bf16.gmra.mrb[72].mxu1 %v698_v11 }
 0x144   : > { %1962 = vmatprep.mubr.msk.bf16.mxu1 %vm2306_vm0, %v2305_v1 }
 0x14b   : > { %1963 = vmatmul.mubr.bf16.gmra.mrb[76].mxu1 %v2552_v27 }
 0x14c   : > { %1966 = vmatprep.mubr.msk.bf16.mxu1 %vm2306_vm0, %v2305_v1 }
 0x153   : > { %1967 = vmatmul.mubr.bf16.gmra.mrb[80].mxu1 %v2560_v45 }
 0x154   : > { %1970 = vmatprep.mubr.msk.bf16.mxu1 %vm2306_vm0, %v2305_v1 }
 0x15b   : > { %1971 = vmatmul.mubr.bf16.gmra.mrb[84].mxu1 %v2572_v0 }
 0x15c   : > { %1974 = vmatprep.mubr.msk.bf16.mxu1 %vm2306_vm0, %v2305_v1 }
 0x163   : > { %1975 = vmatmul.mubr.bf16.gmra.mrb[88].mxu1 %v2587_v22 }
 0x164   : > { %1978 = vmatprep.mubr.msk.bf16.mxu1 %vm2306_vm0, %v2305_v1 }
 0x16b   : > { %1979 = vmatmul.mubr.bf16.gmra.mrb[92].mxu1 %v2603_v43 }
 0x16c   : > { %1982 = vmatprep.mubr.msk.bf16.mxu1 %vm2306_vm0, %v2305_v1 }
 0x173   : > { %1983 = vmatmul.mubr.bf16.gmra.mrb[96].mxu1 %v2619_v2 }
 0x174   : > { %1986 = vmatprep.mubr.msk.bf16.mxu1 %vm2306_vm0, %v2305_v1 }
 0x17b   : > { %1987 = vmatmul.mubr.bf16.gmra.mrb[100].mxu1 %v2631_v23 }
 0x17c   : > { %1990 = vmatprep.mubr.msk.bf16.mxu1 %vm2306_vm0, %v2305_v1 }
 0x183   : > { %1991 = vmatmul.mubr.bf16.gmra.mrb[104].mxu1 %v706_v42 }
 0x184   : > { %1994 = vmatprep.mubr.msk.bf16.mxu1 %vm2306_vm0, %v2305_v1 }
 0x18b   : > { %1995 = vmatmul.mubr.bf16.gmra.mrb[108].mxu1 %v707_v62 }
 0x1ce   : > { %v813_v27 = vpop.f32.mrb[36].mxu1 }
 0x1cf   : > { %v814_v45 = vadd.f32 %v2677_v9, %v813_v27  ;;  %v1924_v0 = vpop.f32.mrb[37].mxu1 }
 0x1d0   : > { %v816_v22 = vpop.f32.mrb[38].mxu1 }
 0x1d1   : > { %v817_v43 = vadd.f32 %v2677_v9, %v816_v22  ;;  %v1925_v2 = vpop.f32.mrb[39].mxu1  ;;  %v964_v12 = vmax.f32 %v814_v45, 0.0 }
 0x1d3   : > { %v965_v13 = vmax.f32 %v817_v43, 0.0 }
 0x1d5   : > { %v1002_v14 = vpack.c.bf16 %v965_v13, %v964_v12 }
 0x1d6   : > { %v821_v15 = vpop.f32.mrb[40].mxu1 }
 0x1d7   : > { %v822_v16 = vadd.f32 %v2677_v9, %v821_v15  ;;  %v1928_v17 = vpop.f32.mrb[41].mxu1  ;;  %2015 = vmatmul.mubr.bf16.vlgmr.msra.gmra.mrb[40].mxu0 %v1002_v14 }
 0x1d8   : > { %v824_v18 = vpop.f32.mrb[42].mxu1  ;;  %2018 = vmatprep.mubr.msk.bf16.mxu0 %vm2306_vm0, %v2305_v1 }
 0x1d9   : > { %v825_v19 = vadd.f32 %v2677_v9, %v824_v18  ;;  %v1929_v20 = vpop.f32.mrb[43].mxu1  ;;  %v966_v21 = vmax.f32 %v822_v16, 0.0 }
 0x1db   : > { %v967_v23 = vmax.f32 %v825_v19, 0.0 }
 0x1dd   : > { %v1003_v24 = vpack.c.bf16 %v967_v23, %v966_v21 }
 0x1de   : > { %v829_v25 = vpop.f32.mrb[44].mxu1 }
 0x1df   : > { %v830_v26 = vadd.f32 %v2677_v9, %v829_v25  ;;  %v1932_v28 = vpop.f32.mrb[45].mxu1  ;;  %2019 = vmatmul.mubr.bf16.gmra.mrb[44].mxu0 %v1003_v24 }
 0x1e0   : > { %v832_v29 = vpop.f32.mrb[46].mxu1  ;;  %2022 = vmatprep.mubr.msk.bf16.mxu0 %vm2306_vm0, %v2305_v1 }
 0x1e1   : > { %v833_v30 = vadd.f32 %v2677_v9, %v832_v29  ;;  %v1933_v31 = vpop.f32.mrb[47].mxu1  ;;  %v968_v32 = vmax.f32 %v830_v26, 0.0 }
 0x1e3   : > { %v969_v33 = vmax.f32 %v833_v30, 0.0 }
 0x1e5   : > { %v1004_v34 = vpack.c.bf16 %v969_v33, %v968_v32 }
 0x1e6   : > { %v837_v35 = vpop.f32.mrb[48].mxu1 }
 0x1e7   : > { %v838_v36 = vadd.f32 %v2677_v9, %v837_v35  ;;  %v1936_v37 = vpop.f32.mrb[49].mxu1  ;;  %2023 = vmatmul.mubr.bf16.gmra.mrb[48].mxu0 %v1004_v34 }
 0x1e8   : > { %v840_v38 = vpop.f32.mrb[50].mxu1  ;;  %2026 = vmatprep.mubr.msk.bf16.mxu0 %vm2306_vm0, %v2305_v1 }
 0x1e9   : > { %v841_v39 = vadd.f32 %v2677_v9, %v840_v38  ;;  %v1937_v40 = vpop.f32.mrb[51].mxu1  ;;  %v970_v41 = vmax.f32 %v838_v36, 0.0 }
 0x1eb   : > { %v971_v42 = vmax.f32 %v841_v39, 0.0 }
 0x1ed   : > { %v1005_v44 = vpack.c.bf16 %v971_v42, %v970_v41 }
 0x1ee   : > { %v845_v46 = vpop.f32.mrb[52].mxu1 }
 0x1ef   : > { %v846_v47 = vadd.f32 %v2677_v9, %v845_v46  ;;  %v1940_v48 = vpop.f32.mrb[53].mxu1  ;;  %2027 = vmatmul.mubr.bf16.gmra.mrb[52].mxu0 %v1005_v44 }
 0x1f0   : > { %v848_v49 = vpop.f32.mrb[54].mxu1  ;;  %2030 = vmatprep.mubr.msk.bf16.mxu0 %vm2306_vm0, %v2305_v1 }
 0x1f1   : > { %v849_v50 = vadd.f32 %v2677_v9, %v848_v49  ;;  %v1941_v51 = vpop.f32.mrb[55].mxu1  ;;  %v972_v52 = vmax.f32 %v846_v47, 0.0 }
 0x1f3   : > { %v973_v53 = vmax.f32 %v849_v50, 0.0 }
 0x1f5   : > { %v1006_v54 = vpack.c.bf16 %v973_v53, %v972_v52 }
 0x1f6   : > { %v853_v55 = vpop.f32.mrb[56].mxu1 }
 0x1f7   : > { %v854_v56 = vadd.f32 %v2677_v9, %v853_v55  ;;  %v1944_v57 = vpop.f32.mrb[57].mxu1  ;;  %2031 = vmatmul.mubr.bf16.gmra.mrb[56].mxu0 %v1006_v54 }
 0x1f8   : > { %v856_v58 = vpop.f32.mrb[58].mxu1  ;;  %2034 = vmatprep.mubr.msk.bf16.mxu0 %vm2306_vm0, %v2305_v1 }
 0x1f9   : > { %v857_v59 = vadd.f32 %v2677_v9, %v856_v58  ;;  %v1945_v60 = vpop.f32.mrb[59].mxu1  ;;  %v974_v61 = vmax.f32 %v854_v56, 0.0 }
 0x1fb   : > { %v975_v62 = vmax.f32 %v857_v59, 0.0 }
 0x1fd   : > { %v1007_v63 = vpack.c.bf16 %v975_v62, %v974_v61 }
 0x1fe   : > { %v861_v3 = vpop.f32.mrb[60].mxu1 }
 0x1ff   : > { %v862_v4 = vadd.f32 %v2677_v9, %v861_v3  ;;  %v1948_v5 = vpop.f32.mrb[61].mxu1  ;;  %2035 = vmatmul.mubr.bf16.gmra.mrb[60].mxu0 %v1007_v63 }
 0x200   : > { %v864_v6 = vpop.f32.mrb[62].mxu1  ;;  %2038 = vmatprep.mubr.msk.bf16.mxu0 %vm2306_vm0, %v2305_v1 }
 0x201   : > { %v865_v7 = vadd.f32 %v2677_v9, %v864_v6  ;;  %v1949_v8 = vpop.f32.mrb[63].mxu1  ;;  %v976_v10 = vmax.f32 %v862_v4, 0.0 }
 0x203   : > { %v977_v11 = vmax.f32 %v865_v7, 0.0 }
 0x205   : > { %v1008_v27 = vpack.c.bf16 %v977_v11, %v976_v10 }
 0x206   : > { %v869_v45 = vpop.f32.mrb[64].mxu1 }
 0x207   : > { %v870_v0 = vadd.f32 %v2677_v9, %v869_v45  ;;  %v1952_v22 = vpop.f32.mrb[65].mxu1  ;;  %2039 = vmatmul.mubr.bf16.gmra.mrb[64].mxu0 %v1008_v27 }
 0x208   : > { %v872_v43 = vpop.f32.mrb[66].mxu1  ;;  %2042 = vmatprep.mubr.msk.bf16.mxu0 %vm2306_vm0, %v2305_v1 }
 0x209   : > { %v873_v2 = vadd.f32 %v2677_v9, %v872_v43  ;;  %v1953_v12 = vpop.f32.mrb[67].mxu1  ;;  %v978_v13 = vmax.f32 %v870_v0, 0.0 }
 0x20b   : > { %v979_v14 = vmax.f32 %v873_v2, 0.0 }
 0x20d   : > { %v1009_v15 = vpack.c.bf16 %v979_v14, %v978_v13 }
 0x20e   : > { %v877_v16 = vpop.f32.mrb[68].mxu1 }
 0x20f   : > { %v878_v17 = vadd.f32 %v2677_v9, %v877_v16  ;;  %v1956_v18 = vpop.f32.mrb[69].mxu1  ;;  %2043 = vmatmul.mubr.bf16.gmra.mrb[68].mxu0 %v1009_v15 }
 0x210   : > { %v880_v19 = vpop.f32.mrb[70].mxu1  ;;  %2046 = vmatprep.mubr.msk.bf16.mxu0 %vm2306_vm0, %v2305_v1 }
 0x211   : > { %v881_v20 = vadd.f32 %v2677_v9, %v880_v19  ;;  %v1957_v21 = vpop.f32.mrb[71].mxu1  ;;  %v980_v23 = vmax.f32 %v878_v17, 0.0 }
 0x213   : > { %v981_v24 = vmax.f32 %v881_v20, 0.0 }
 0x215   : > { %v1010_v25 = vpack.c.bf16 %v981_v24, %v980_v23 }
 0x216   : > { %v885_v26 = vpop.f32.mrb[72].mxu1 }
 0x217   : > { %v886_v28 = vadd.f32 %v2677_v9, %v885_v26  ;;  %v1960_v29 = vpop.f32.mrb[73].mxu1  ;;  %2047 = vmatmul.mubr.bf16.gmra.mrb[72].mxu0 %v1010_v25 }
 0x218   : > { %v888_v30 = vpop.f32.mrb[74].mxu1  ;;  %2050 = vmatprep.mubr.msk.bf16.mxu0 %vm2306_vm0, %v2305_v1 }
 0x219   : > { %v889_v31 = vadd.f32 %v2677_v9, %v888_v30  ;;  %v1961_v32 = vpop.f32.mrb[75].mxu1  ;;  %v982_v33 = vmax.f32 %v886_v28, 0.0 }
 0x21b   : > { %v983_v34 = vmax.f32 %v889_v31, 0.0 }
 0x21d   : > { %v1011_v35 = vpack.c.bf16 %v983_v34, %v982_v33 }
 0x21e   : > { %v893_v36 = vpop.f32.mrb[76].mxu1 }
 0x21f   : > { %v894_v37 = vadd.f32 %v2677_v9, %v893_v36  ;;  %v1964_v38 = vpop.f32.mrb[77].mxu1  ;;  %2051 = vmatmul.mubr.bf16.gmra.mrb[76].mxu0 %v1011_v35 }
 0x220   : > { %v896_v39 = vpop.f32.mrb[78].mxu1  ;;  %2054 = vmatprep.mubr.msk.bf16.mxu0 %vm2306_vm0, %v2305_v1 }
 0x221   : > { %v897_v40 = vadd.f32 %v2677_v9, %v896_v39  ;;  %v1965_v41 = vpop.f32.mrb[79].mxu1  ;;  %v984_v42 = vmax.f32 %v894_v37, 0.0 }
 0x223   : > { %v985_v44 = vmax.f32 %v897_v40, 0.0 }
 0x225   : > { %v1012_v46 = vpack.c.bf16 %v985_v44, %v984_v42 }
 0x226   : > { %v901_v47 = vpop.f32.mrb[80].mxu1 }
 0x227   : > { %v902_v48 = vadd.f32 %v2677_v9, %v901_v47  ;;  %v1968_v49 = vpop.f32.mrb[81].mxu1  ;;  %2055 = vmatmul.mubr.bf16.gmra.mrb[80].mxu0 %v1012_v46 }
 0x228   : > { %v904_v50 = vpop.f32.mrb[82].mxu1  ;;  %2058 = vmatprep.mubr.msk.bf16.mxu0 %vm2306_vm0, %v2305_v1 }
 0x229   : > { %v905_v51 = vadd.f32 %v2677_v9, %v904_v50  ;;  %v1969_v52 = vpop.f32.mrb[83].mxu1  ;;  %v986_v53 = vmax.f32 %v902_v48, 0.0 }
 0x22b   : > { %v987_v54 = vmax.f32 %v905_v51, 0.0 }
 0x22d   : > { %v1013_v55 = vpack.c.bf16 %v987_v54, %v986_v53 }
 0x22e   : > { %v909_v56 = vpop.f32.mrb[84].mxu1 }
 0x22f   : > { %v910_v57 = vadd.f32 %v2677_v9, %v909_v56  ;;  %v1972_v58 = vpop.f32.mrb[85].mxu1  ;;  %2059 = vmatmul.mubr.bf16.gmra.mrb[84].mxu0 %v1013_v55 }
 0x230   : > { %v912_v59 = vpop.f32.mrb[86].mxu1  ;;  %2062 = vmatprep.mubr.msk.bf16.mxu0 %vm2306_vm0, %v2305_v1 }
 0x231   : > { %v913_v60 = vadd.f32 %v2677_v9, %v912_v59  ;;  %v1973_v61 = vpop.f32.mrb[87].mxu1  ;;  %v988_v62 = vmax.f32 %v910_v57, 0.0  ;;  %v2757_v57 = vld [vmem:[%s3030_s6] ss:$0 sm:$0xff] }
 0x233   : > { %v989_v63 = vmax.f32 %v913_v60, 0.0 }
 0x235   : > { %v1014_v3 = vpack.c.bf16 %v989_v63, %v988_v62 }
 0x236   : > { %v917_v4 = vpop.f32.mrb[88].mxu1 }
 0x237   : > { %v918_v5 = vadd.f32 %v2677_v9, %v917_v4  ;;  %v1976_v6 = vpop.f32.mrb[89].mxu1  ;;  %2063 = vmatmul.mubr.bf16.gmra.mrb[88].mxu0 %v1014_v3 }
 0x238   : > { %v920_v7 = vpop.f32.mrb[90].mxu1  ;;  %2066 = vmatprep.mubr.msk.bf16.mxu0 %vm2306_vm0, %v2305_v1 }
 0x239   : > { %v921_v8 = vadd.f32 %v2677_v9, %v920_v7  ;;  %v1977_v10 = vpop.f32.mrb[91].mxu1  ;;  %v990_v11 = vmax.f32 %v918_v5, 0.0 }
 0x23b   : > { %v991_v27 = vmax.f32 %v921_v8, 0.0 }
 0x23d   : > { %v1015_v45 = vpack.c.bf16 %v991_v27, %v990_v11 }
 0x23e   : > { %v925_v0 = vpop.f32.mrb[92].mxu1 }
 0x23f   : > { %v926_v22 = vadd.f32 %v2677_v9, %v925_v0  ;;  %v1980_v43 = vpop.f32.mrb[93].mxu1  ;;  %2067 = vmatmul.mubr.bf16.gmra.mrb[92].mxu0 %v1015_v45 }
 0x240   : > { %v928_v2 = vpop.f32.mrb[94].mxu1  ;;  %2070 = vmatprep.mubr.msk.bf16.mxu0 %vm2306_vm0, %v2305_v1 }
 0x241   : > { %v929_v12 = vadd.f32 %v2677_v9, %v928_v2  ;;  %v1981_v13 = vpop.f32.mrb[95].mxu1  ;;  %v992_v14 = vmax.f32 %v926_v22, 0.0 }
 0x243   : > { %v993_v15 = vmax.f32 %v929_v12, 0.0 }
 0x245   : > { %v1016_v16 = vpack.c.bf16 %v993_v15, %v992_v14 }
 0x246   : > { %v933_v17 = vpop.f32.mrb[96].mxu1 }
 0x247   : > { %v934_v18 = vadd.f32 %v2677_v9, %v933_v17  ;;  %v1984_v19 = vpop.f32.mrb[97].mxu1  ;;  %2071 = vmatmul.mubr.bf16.gmra.mrb[96].mxu0 %v1016_v16 }
 0x248   : > { %v936_v20 = vpop.f32.mrb[98].mxu1  ;;  %2074 = vmatprep.mubr.msk.bf16.mxu0 %vm2306_vm0, %v2305_v1 }
 0x249   : > { %v937_v21 = vadd.f32 %v2677_v9, %v936_v20  ;;  %v1985_v23 = vpop.f32.mrb[99].mxu1  ;;  %v994_v24 = vmax.f32 %v934_v18, 0.0 }
 0x24b   : > { %v995_v25 = vmax.f32 %v937_v21, 0.0 }
 0x24d   : > { %v1017_v26 = vpack.c.bf16 %v995_v25, %v994_v24 }
 0x24e   : > { %v941_v28 = vpop.f32.mrb[100].mxu1 }
 0x24f   : > { %v942_v29 = vadd.f32 %v2677_v9, %v941_v28  ;;  %v1988_v30 = vpop.f32.mrb[101].mxu1  ;;  %2075 = vmatmul.mubr.bf16.gmra.mrb[100].mxu0 %v1017_v26 }
 0x250   : > { %v944_v31 = vpop.f32.mrb[102].mxu1  ;;  %2078 = vmatprep.mubr.msk.bf16.mxu0 %vm2306_vm0, %v2305_v1 }
 0x251   : > { %v945_v32 = vadd.f32 %v2677_v9, %v944_v31  ;;  %v1989_v33 = vpop.f32.mrb[103].mxu1  ;;  %v996_v34 = vmax.f32 %v942_v29, 0.0 }
 0x253   : > { %v997_v35 = vmax.f32 %v945_v32, 0.0 }
 0x255   : > { %v1018_v36 = vpack.c.bf16 %v997_v35, %v996_v34 }
 0x256   : > { %v949_v37 = vpop.f32.mrb[104].mxu1 }
 0x257   : > { %v950_v38 = vadd.f32 %v2677_v9, %v949_v37  ;;  %v1992_v39 = vpop.f32.mrb[105].mxu1  ;;  %2079 = vmatmul.mubr.bf16.gmra.mrb[104].mxu0 %v1018_v36 }
 0x258   : > { %v952_v40 = vpop.f32.mrb[106].mxu1  ;;  %2082 = vmatprep.mubr.msk.bf16.mxu0 %vm2306_vm0, %v2305_v1 }
 0x259   : > { %v953_v41 = vadd.f32 %v2677_v9, %v952_v40  ;;  %v1993_v42 = vpop.f32.mrb[107].mxu1  ;;  %v998_v44 = vmax.f32 %v950_v38, 0.0 }
 0x25b   : > { %v999_v46 = vmax.f32 %v953_v41, 0.0 }
 0x25d   : > { %v1019_v47 = vpack.c.bf16 %v999_v46, %v998_v44 }
 0x25e   : > { %v957_v48 = vpop.f32.mrb[108].mxu1 }
 0x25f   : > { %v958_v49 = vadd.f32 %v2677_v9, %v957_v48  ;;  %v1996_v50 = vpop.f32.mrb[109].mxu1  ;;  %2083 = vmatmul.mubr.bf16.gmra.mrb[108].mxu0 %v1019_v47 }
 0x260   : > { %v960_v51 = vpop.f32.mrb[110].mxu1  ;;  %2086 = vmatprep.mubr.msk.bf16.mxu0 %vm2306_vm0, %v2305_v1 }
 0x261   : > { %v961_v52 = vadd.f32 %v2677_v9, %v960_v51  ;;  %v1997_v53 = vpop.f32.mrb[111].mxu1  ;;  %v1000_v54 = vmax.f32 %v958_v49, 0.0 }
 0x263   : > { %v1001_v55 = vmax.f32 %v961_v52, 0.0 }
 0x265   : > { %v1020_v56 = vpack.c.bf16 %v1001_v55, %v1000_v54 }
 0x267   : > { %2087 = vmatmul.mubr.bf16.gmra.mrb[112].mxu0 %v1020_v56 }
 0x2aa   : > { %v1126_v58 = vpop.f32.mrb[40].mxu0 }
 0x2ab   : > { %v1127_v59 = vadd.f32 %v2757_v57, %v1126_v58  ;;  %v2016_v60 = vpop.f32.mrb[41].mxu0 }
 0x2ac   : > { %v1129_v1 = vpop.f32.mrb[42].mxu0 }
 0x2ad   : > { %1278 = vst.msk [vmem:[%s2760_s18] sm:$0xff] %vm1277_vm3, %v1127_v59  ;;  %v1130_v9 = vadd.f32 %v2757_v57, %v1129_v1  ;;  %v2017_v61 = vpop.f32.mrb[43].mxu0 }
 0x2af   : > { %1279 = vst.msk [vmem:[%s2760_s18 + $0x8] sm:$0xff] %vm1277_vm3, %v1130_v9 }
 0x2b2   : > { %v1134_v62 = vpop.f32.mrb[44].mxu0 }
 0x2b3   : > { %v1135_v63 = vadd.f32 %v2757_v57, %v1134_v62  ;;  %v2020_v3 = vpop.f32.mrb[45].mxu0 }
 0x2b4   : > { %v1137_v4 = vpop.f32.mrb[46].mxu0 }
 0x2b5   : > { %1280 = vst.msk [vmem:[%s2760_s18 + $0x10] sm:$0xff] %vm1277_vm3, %v1135_v63  ;;  %v1138_v5 = vadd.f32 %v2757_v57, %v1137_v4  ;;  %v2021_v6 = vpop.f32.mrb[47].mxu0 }
 0x2b7   : > { %1281 = vst.msk [vmem:[%s2760_s18 + $0x18] sm:$0xff] %vm1277_vm3, %v1138_v5 }
 0x2ba   : > { %v1142_v7 = vpop.f32.mrb[48].mxu0 }
 0x2bb   : > { %v1143_v8 = vadd.f32 %v2757_v57, %v1142_v7  ;;  %v2024_v10 = vpop.f32.mrb[49].mxu0 }
 0x2bc   : > { %v1145_v11 = vpop.f32.mrb[50].mxu0 }
 0x2bd   : > { %1282 = vst.msk [vmem:[%s2760_s18 + $0x20] sm:$0xff] %vm1277_vm3, %v1143_v8  ;;  %v1146_v27 = vadd.f32 %v2757_v57, %v1145_v11  ;;  %v2025_v45 = vpop.f32.mrb[51].mxu0 }
 0x2bf   : > { %1283 = vst.msk [vmem:[%s2760_s18 + $0x28] sm:$0xff] %vm1277_vm3, %v1146_v27 }
 0x2c2   : > { %v1150_v0 = vpop.f32.mrb[52].mxu0 }
 0x2c3   : > { %v1151_v22 = vadd.f32 %v2757_v57, %v1150_v0  ;;  %v2028_v43 = vpop.f32.mrb[53].mxu0 }
 0x2c4   : > { %v1153_v2 = vpop.f32.mrb[54].mxu0 }
 0x2c5   : > { %1284 = vst.msk [vmem:[%s2760_s18 + $0x30] sm:$0xff] %vm1277_vm3, %v1151_v22  ;;  %v1154_v12 = vadd.f32 %v2757_v57, %v1153_v2  ;;  %v2029_v13 = vpop.f32.mrb[55].mxu0 }
 0x2c7   : > { %1285 = vst.msk [vmem:[%s2760_s18 + $0x38] sm:$0xff] %vm1277_vm3, %v1154_v12 }
 0x2ca   : > { %v1158_v14 = vpop.f32.mrb[56].mxu0 }
 0x2cb   : > { %v1159_v15 = vadd.f32 %v2757_v57, %v1158_v14  ;;  %v2032_v16 = vpop.f32.mrb[57].mxu0 }
 0x2cc   : > { %v1161_v17 = vpop.f32.mrb[58].mxu0 }
 0x2cd   : > { %1286 = vst.msk [vmem:[%s2760_s18 + $0x40] sm:$0xff] %vm1277_vm3, %v1159_v15  ;;  %v1162_v18 = vadd.f32 %v2757_v57, %v1161_v17  ;;  %v2033_v19 = vpop.f32.mrb[59].mxu0 }
 0x2cf   : > { %1287 = vst.msk [vmem:[%s2760_s18 + $0x48] sm:$0xff] %vm1277_vm3, %v1162_v18 }
 0x2d2   : > { %v1166_v20 = vpop.f32.mrb[60].mxu0 }
 0x2d3   : > { %v1167_v21 = vadd.f32 %v2757_v57, %v1166_v20  ;;  %v2036_v23 = vpop.f32.mrb[61].mxu0 }
 0x2d4   : > { %v1169_v24 = vpop.f32.mrb[62].mxu0 }
 0x2d5   : > { %1288 = vst.msk [vmem:[%s2760_s18 + $0x50] sm:$0xff] %vm1277_vm3, %v1167_v21  ;;  %v1170_v25 = vadd.f32 %v2757_v57, %v1169_v24  ;;  %v2037_v26 = vpop.f32.mrb[63].mxu0 }
 0x2d7   : > { %1289 = vst.msk [vmem:[%s2760_s18 + $0x58] sm:$0xff] %vm1277_vm3, %v1170_v25 }
 0x2da   : > { %v1174_v28 = vpop.f32.mrb[64].mxu0 }
 0x2db   : > { %v1175_v29 = vadd.f32 %v2757_v57, %v1174_v28  ;;  %v2040_v30 = vpop.f32.mrb[65].mxu0 }
 0x2dc   : > { %v1177_v31 = vpop.f32.mrb[66].mxu0 }
 0x2dd   : > { %1290 = vst.msk [vmem:[%s2760_s18 + $0x60] sm:$0xff] %vm1277_vm3, %v1175_v29  ;;  %v1178_v32 = vadd.f32 %v2757_v57, %v1177_v31  ;;  %v2041_v33 = vpop.f32.mrb[67].mxu0 }
 0x2df   : > { %1291 = vst.msk [vmem:[%s2760_s18 + $0x68] sm:$0xff] %vm1277_vm3, %v1178_v32 }
 0x2e2   : > { %v1182_v34 = vpop.f32.mrb[68].mxu0 }
 0x2e3   : > { %v1183_v35 = vadd.f32 %v2757_v57, %v1182_v34  ;;  %v2044_v36 = vpop.f32.mrb[69].mxu0 }
 0x2e4   : > { %v1185_v37 = vpop.f32.mrb[70].mxu0 }
 0x2e5   : > { %1292 = vst.msk [vmem:[%s2760_s18 + $0x70] sm:$0xff] %vm1277_vm3, %v1183_v35  ;;  %v1186_v38 = vadd.f32 %v2757_v57, %v1185_v37  ;;  %v2045_v39 = vpop.f32.mrb[71].mxu0 }
 0x2e7   : > { %1293 = vst.msk [vmem:[%s2760_s18 + $0x78] sm:$0xff] %vm1277_vm3, %v1186_v38 }
 0x2ea   : > { %v1190_v40 = vpop.f32.mrb[72].mxu0 }
 0x2eb   : > { %v1191_v41 = vadd.f32 %v2757_v57, %v1190_v40  ;;  %v2048_v42 = vpop.f32.mrb[73].mxu0 }
 0x2ec   : > { %v1193_v44 = vpop.f32.mrb[74].mxu0 }
 0x2ed   : > { %1294 = vst.msk [vmem:[%s2760_s18 + $0x80] sm:$0xff] %vm1277_vm3, %v1191_v41  ;;  %v1194_v46 = vadd.f32 %v2757_v57, %v1193_v44  ;;  %v2049_v47 = vpop.f32.mrb[75].mxu0 }
 0x2ef   : > { %1295 = vst.msk [vmem:[%s2760_s18 + $0x88] sm:$0xff] %vm1277_vm3, %v1194_v46 }
 0x2f2   : > { %v1198_v48 = vpop.f32.mrb[76].mxu0 }
 0x2f3   : > { %v1199_v49 = vadd.f32 %v2757_v57, %v1198_v48  ;;  %v2052_v50 = vpop.f32.mrb[77].mxu0 }
 0x2f4   : > { %v1201_v51 = vpop.f32.mrb[78].mxu0 }
 0x2f5   : > { %1296 = vst.msk [vmem:[%s2760_s18 + $0x90] sm:$0xff] %vm1277_vm3, %v1199_v49  ;;  %v1202_v52 = vadd.f32 %v2757_v57, %v1201_v51  ;;  %v2053_v53 = vpop.f32.mrb[79].mxu0 }
 0x2f7   : > { %1297 = vst.msk [vmem:[%s2760_s18 + $0x98] sm:$0xff] %vm1277_vm3, %v1202_v52 }
 0x2fa   : > { %v1206_v54 = vpop.f32.mrb[80].mxu0 }
 0x2fb   : > { %v1207_v55 = vadd.f32 %v2757_v57, %v1206_v54  ;;  %v2056_v56 = vpop.f32.mrb[81].mxu0 }
 0x2fc   : > { %v1209_v58 = vpop.f32.mrb[82].mxu0 }
 0x2fd   : > { %1298 = vst.msk [vmem:[%s2760_s18 + $0xa0] sm:$0xff] %vm1277_vm3, %v1207_v55  ;;  %v1210_v59 = vadd.f32 %v2757_v57, %v1209_v58  ;;  %v2057_v60 = vpop.f32.mrb[83].mxu0 }
 0x2ff   : > { %1299 = vst.msk [vmem:[%s2760_s18 + $0xa8] sm:$0xff] %vm1277_vm3, %v1210_v59 }
 0x302   : > { %v1214_v1 = vpop.f32.mrb[84].mxu0 }
 0x303   : > { %v1215_v9 = vadd.f32 %v2757_v57, %v1214_v1  ;;  %v2060_v61 = vpop.f32.mrb[85].mxu0 }
 0x304   : > { %v1217_v62 = vpop.f32.mrb[86].mxu0 }
 0x305   : > { %1300 = vst.msk [vmem:[%s2760_s18 + $0xb0] sm:$0xff] %vm1277_vm3, %v1215_v9  ;;  %v1218_v63 = vadd.f32 %v2757_v57, %v1217_v62  ;;  %v2061_v3 = vpop.f32.mrb[87].mxu0 }
 0x307   : > { %1301 = vst.msk [vmem:[%s2760_s18 + $0xb8] sm:$0xff] %vm1277_vm3, %v1218_v63 }
 0x30a   : > { %v1222_v4 = vpop.f32.mrb[88].mxu0 }
 0x30b   : > { %v1223_v5 = vadd.f32 %v2757_v57, %v1222_v4  ;;  %v2064_v6 = vpop.f32.mrb[89].mxu0 }
 0x30c   : > { %v1225_v7 = vpop.f32.mrb[90].mxu0 }
 0x30d   : > { %1302 = vst.msk [vmem:[%s2760_s18 + $0xc0] sm:$0xff] %vm1277_vm3, %v1223_v5  ;;  %v1226_v8 = vadd.f32 %v2757_v57, %v1225_v7  ;;  %v2065_v10 = vpop.f32.mrb[91].mxu0 }
 0x30f   : > { %1303 = vst.msk [vmem:[%s2760_s18 + $0xc8] sm:$0xff] %vm1277_vm3, %v1226_v8 }
 0x312   : > { %v1230_v11 = vpop.f32.mrb[92].mxu0 }
 0x313   : > { %v1231_v27 = vadd.f32 %v2757_v57, %v1230_v11  ;;  %v2068_v45 = vpop.f32.mrb[93].mxu0 }
 0x314   : > { %v1233_v0 = vpop.f32.mrb[94].mxu0 }
 0x315   : > { %1304 = vst.msk [vmem:[%s2760_s18 + $0xd0] sm:$0xff] %vm1277_vm3, %v1231_v27  ;;  %v1234_v22 = vadd.f32 %v2757_v57, %v1233_v0  ;;  %v2069_v43 = vpop.f32.mrb[95].mxu0 }
 0x317   : > { %1305 = vst.msk [vmem:[%s2760_s18 + $0xd8] sm:$0xff] %vm1277_vm3, %v1234_v22 }
 0x31a   : > { %v1238_v2 = vpop.f32.mrb[96].mxu0 }
 0x31b   : > { %v1239_v12 = vadd.f32 %v2757_v57, %v1238_v2  ;;  %v2072_v13 = vpop.f32.mrb[97].mxu0 }
 0x31c   : > { %v1241_v14 = vpop.f32.mrb[98].mxu0 }
 0x31d   : > { %1306 = vst.msk [vmem:[%s2760_s18 + $0xe0] sm:$0xff] %vm1277_vm3, %v1239_v12  ;;  %v1242_v15 = vadd.f32 %v2757_v57, %v1241_v14  ;;  %v2073_v16 = vpop.f32.mrb[99].mxu0 }
 0x31f   : > { %1307 = vst.msk [vmem:[%s2760_s18 + $0xe8] sm:$0xff] %vm1277_vm3, %v1242_v15 }
 0x322   : > { %v1246_v17 = vpop.f32.mrb[100].mxu0 }
 0x323   : > { %v1247_v18 = vadd.f32 %v2757_v57, %v1246_v17  ;;  %v2076_v19 = vpop.f32.mrb[101].mxu0 }
 0x324   : > { %v1249_v20 = vpop.f32.mrb[102].mxu0 }
 0x325   : > { %1308 = vst.msk [vmem:[%s2760_s18 + $0xf0] sm:$0xff] %vm1277_vm3, %v1247_v18  ;;  %v1250_v21 = vadd.f32 %v2757_v57, %v1249_v20  ;;  %v2077_v23 = vpop.f32.mrb[103].mxu0 }
 0x327   : > { %1309 = vst.msk [vmem:[%s2760_s18 + $0xf8] sm:$0xff] %vm1277_vm3, %v1250_v21 }
 0x32a   : > { %v1254_v24 = vpop.f32.mrb[104].mxu0 }
 0x32b   : > { %v1255_v25 = vadd.f32 %v2757_v57, %v1254_v24  ;;  %v2080_v26 = vpop.f32.mrb[105].mxu0 }
 0x32c   : > { %v1257_v28 = vpop.f32.mrb[106].mxu0 }
 0x32d   : > { %1310 = vst.msk [vmem:[%s2760_s18 + $0x100] sm:$0xff] %vm1277_vm3, %v1255_v25  ;;  %v1258_v29 = vadd.f32 %v2757_v57, %v1257_v28  ;;  %v2081_v30 = vpop.f32.mrb[107].mxu0 }
 0x32f   : > { %1311 = vst.msk [vmem:[%s2760_s18 + $0x108] sm:$0xff] %vm1277_vm3, %v1258_v29 }
 0x332   : > { %v1262_v31 = vpop.f32.mrb[108].mxu0 }
 0x333   : > { %v1263_v32 = vadd.f32 %v2757_v57, %v1262_v31  ;;  %v2084_v33 = vpop.f32.mrb[109].mxu0 }
 0x334   : > { %v1265_v34 = vpop.f32.mrb[110].mxu0 }
 0x335   : > { %1312 = vst.msk [vmem:[%s2760_s18 + $0x110] sm:$0xff] %vm1277_vm3, %v1263_v32  ;;  %v1266_v35 = vadd.f32 %v2757_v57, %v1265_v34  ;;  %v2085_v36 = vpop.f32.mrb[111].mxu0 }
 0x337   : > { %1313 = vst.msk [vmem:[%s2760_s18 + $0x118] sm:$0xff] %vm1277_vm3, %v1266_v35 }
 0x339   : > { %1322 = sbr.rel (!%p2372_p4) target bundleno = 903 (0x387), region = 52 }
 0x33a   : > { %v1270_v37 = vpop.f32.mrb[112].mxu0 }
 0x33b   : > { %v1271_v38 = vadd.f32 %v2757_v57, %v1270_v37  ;;  %v2088_v39 = vpop.f32.mrb[113].mxu0 }
 0x33c   : > { %v1273_v40 = vpop.f32.mrb[114].mxu0 }
 0x33d   : > { %1314 = vst.msk [vmem:[%s2760_s18 + $0x120] sm:$0xff] %vm1277_vm3, %v1271_v38  ;;  %v1274_v41 = vadd.f32 %v2757_v57, %v1273_v40  ;;  %v2089_v42 = vpop.f32.mrb[115].mxu0 }
 0x33f   : > { %1315 = vst.msk [vmem:[%s2760_s18 + $0x128] sm:$0xff] %vm1277_vm3, %v1274_v41 }
 0x340   : > { %s3042_s24 = smov (!%p1325_p8, %s1324_s24), 38 }
 0x341   : > { %s1729_s23 = sshll.u32 %s3042_s24, 7 }
 0x342   : > { %p1732_p9 = scmp.eq.s32.totalorder %s1729_s23, 0 }
 0x343   : > { %2213 = sdivrem.u32 (!%p1732_p9), %s3042_s24, 38 }
 0x344   : > { %1333 = sbr.rel (%p1732_p9) target bundleno = 903 (0x387), region = 56 }
 0x34c   : > { %s2888_s9 = spop.drf %2213 }
 0x34d   : > { %p1733_p10 = scmp.le.s32.totalorder %s2888_s9, 0 }
 0x34e   : > { %s3033_s27 = smov (!%p1733_p10), %s2882_s22  ;;  %s3034_s14 = smov (!%p1733_p10), %s2760_s18 }
 0x34f   : > { %1637 = sbr.rel (%p1733_p10) target bundleno = 874 (0x36a), region = 132  ;;  %s2897_s26 = smov (!%p1733_p10), 0  }
 0x350   : > { %s2899_s30 = smov (!%p1733_p10), 0  }
 0x356 LB: >> { %v1471_v57 = vld [vmem:[%s2279_s14] sm:$0xff]  ;;  %v1473_v44 = vld [vmem:[%s2279_s14 + $0x8] sm:$0xff]  ;;  %v1475_v46 = vld [vmem:[%s2279_s14 + $0x10] sm:$0xff]  ;;  %s1547_s10 = sadd.s32 1, %s2283_s26  ;;  %s1465_s30 = sadd.s32 1, %s2287_s30   ;;  %s2287_s30 = sphi %s2899_s30, %s1465_s30   ;;  %s2283_s26 = sphi %s2897_s26, %s3037_s26   ;;  %s2279_s14 = sphi %s3034_s14, %s3036_s14   ;;  %s2275_s27 = sphi %s3033_s27, %s3035_s27  }
 0x357   : >> { %1472 = vst [vmem:[%s2275_s27] sm:$0xff] %v1471_v57  ;;  %1474 = vst [vmem:[%s2275_s27 + $0x8] sm:$0xff] %v1473_v44  ;;  %v1477_v47 = vld [vmem:[%s2279_s14 + $0x18] sm:$0xff]  ;;  %v1479_v48 = vld [vmem:[%s2279_s14 + $0x20] sm:$0xff]  ;;  %p1548_p11 = scmp.ge.s32.totalorder %s1547_s10, %s2888_s9  ;;  %p1464_p12 = scmp.ge.s32.totalorder %s1465_s30, %s2888_s9 }
 0x358   : >> { %1476 = vst [vmem:[%s2275_s27 + $0x10] sm:$0xff] %v1475_v46  ;;  %v1481_v49 = vld [vmem:[%s2279_s14 + $0x28] sm:$0xff]  ;;  %1478 = vst [vmem:[%s2275_s27 + $0x18] sm:$0xff] %v1477_v47  ;;  %v1483_v50 = vld [vmem:[%s2279_s14 + $0x30] sm:$0xff] }
 0x359   : >> { %1480 = vst [vmem:[%s2275_s27 + $0x20] sm:$0xff] %v1479_v48  ;;  %1482 = vst [vmem:[%s2275_s27 + $0x28] sm:$0xff] %v1481_v49  ;;  %v1485_v51 = vld [vmem:[%s2279_s14 + $0x38] sm:$0xff]  ;;  %v1487_v52 = vld [vmem:[%s2279_s14 + $0x40] sm:$0xff]  ;;  %s3044_s10 = smov (%p1548_p11, %s1547_s10), 0 }
 0x35a   : >> { %1484 = vst [vmem:[%s2275_s27 + $0x30] sm:$0xff] %v1483_v50  ;;  %1486 = vst [vmem:[%s2275_s27 + $0x38] sm:$0xff] %v1485_v51  ;;  %v1489_v53 = vld [vmem:[%s2279_s14 + $0x48] sm:$0xff]  ;;  %v1491_v54 = vld [vmem:[%s2279_s14 + $0x50] sm:$0xff]  ;;  %s1550_s11 = smul.u32 304, %s3044_s10  ;;  %s3037_s26 = smov %s3044_s10 }
 0x35b   : >> { %1488 = vst [vmem:[%s2275_s27 + $0x40] sm:$0xff] %v1487_v52  ;;  %v1493_v55 = vld [vmem:[%s2279_s14 + $0x58] sm:$0xff]  ;;  %1490 = vst [vmem:[%s2275_s27 + $0x48] sm:$0xff] %v1489_v53  ;;  %v1495_v56 = vld [vmem:[%s2279_s14 + $0x60] sm:$0xff] }
 0x35c   : >> { %1492 = vst [vmem:[%s2275_s27 + $0x50] sm:$0xff] %v1491_v54  ;;  %1494 = vst [vmem:[%s2275_s27 + $0x58] sm:$0xff] %v1493_v55  ;;  %v1497_v58 = vld [vmem:[%s2279_s14 + $0x68] sm:$0xff]  ;;  %v1499_v59 = vld [vmem:[%s2279_s14 + $0x70] sm:$0xff]  ;;  %s2961_s29 = scalar_lea.vmem %s2760_s18, %s1550_s11 [#allocation2]   ;;  %s2964_s12 = scalar_lea.vmem %s2882_s22, %s1550_s11  }
 0x35d   : >> { %1496 = vst [vmem:[%s2275_s27 + $0x60] sm:$0xff] %v1495_v56  ;;  %1498 = vst [vmem:[%s2275_s27 + $0x68] sm:$0xff] %v1497_v58  ;;  %v1501_v60 = vld [vmem:[%s2279_s14 + $0x78] sm:$0xff]  ;;  %v1503_v1 = vld [vmem:[%s2279_s14 + $0x80] sm:$0xff] }
 0x35e   : >> { %1500 = vst [vmem:[%s2275_s27 + $0x70] sm:$0xff] %v1499_v59  ;;  %v1505_v9 = vld [vmem:[%s2279_s14 + $0x88] sm:$0xff]  ;;  %1502 = vst [vmem:[%s2275_s27 + $0x78] sm:$0xff] %v1501_v60  ;;  %v1507_v61 = vld [vmem:[%s2279_s14 + $0x90] sm:$0xff] }
 0x35f   : >> { %1504 = vst [vmem:[%s2275_s27 + $0x80] sm:$0xff] %v1503_v1  ;;  %1506 = vst [vmem:[%s2275_s27 + $0x88] sm:$0xff] %v1505_v9  ;;  %v1509_v62 = vld [vmem:[%s2279_s14 + $0x98] sm:$0xff]  ;;  %v1511_v63 = vld [vmem:[%s2279_s14 + $0xa0] sm:$0xff] }
 0x360   : >> { %1508 = vst [vmem:[%s2275_s27 + $0x90] sm:$0xff] %v1507_v61  ;;  %1510 = vst [vmem:[%s2275_s27 + $0x98] sm:$0xff] %v1509_v62  ;;  %v1513_v3 = vld [vmem:[%s2279_s14 + $0xa8] sm:$0xff]  ;;  %v1515_v4 = vld [vmem:[%s2279_s14 + $0xb0] sm:$0xff] }
 0x361   : >> { %1512 = vst [vmem:[%s2275_s27 + $0xa0] sm:$0xff] %v1511_v63  ;;  %v1517_v5 = vld [vmem:[%s2279_s14 + $0xb8] sm:$0xff]  ;;  %1514 = vst [vmem:[%s2275_s27 + $0xa8] sm:$0xff] %v1513_v3  ;;  %v1519_v6 = vld [vmem:[%s2279_s14 + $0xc0] sm:$0xff] }
 0x362   : >> { %1516 = vst [vmem:[%s2275_s27 + $0xb0] sm:$0xff] %v1515_v4  ;;  %1518 = vst [vmem:[%s2275_s27 + $0xb8] sm:$0xff] %v1517_v5  ;;  %v1521_v7 = vld [vmem:[%s2279_s14 + $0xc8] sm:$0xff]  ;;  %v1523_v8 = vld [vmem:[%s2279_s14 + $0xd0] sm:$0xff] }
 0x363   : >> { %1520 = vst [vmem:[%s2275_s27 + $0xc0] sm:$0xff] %v1519_v6  ;;  %1522 = vst [vmem:[%s2275_s27 + $0xc8] sm:$0xff] %v1521_v7  ;;  %v1525_v10 = vld [vmem:[%s2279_s14 + $0xd8] sm:$0xff]  ;;  %v1527_v11 = vld [vmem:[%s2279_s14 + $0xe0] sm:$0xff]  ;;  %1467 = sbr.rel (!%p1464_p12) target bundleno = 854 (0x356), region = 138 }
 0x364   : >> { %1524 = vst [vmem:[%s2275_s27 + $0xd0] sm:$0xff] %v1523_v8  ;;  %v1529_v27 = vld [vmem:[%s2279_s14 + $0xe8] sm:$0xff]  ;;  %1526 = vst [vmem:[%s2275_s27 + $0xd8] sm:$0xff] %v1525_v10  ;;  %v1531_v45 = vld [vmem:[%s2279_s14 + $0xf0] sm:$0xff] }
 0x365   : >> { %1528 = vst [vmem:[%s2275_s27 + $0xe0] sm:$0xff] %v1527_v11  ;;  %1530 = vst [vmem:[%s2275_s27 + $0xe8] sm:$0xff] %v1529_v27  ;;  %v1533_v0 = vld [vmem:[%s2279_s14 + $0xf8] sm:$0xff]  ;;  %v1535_v22 = vld [vmem:[%s2279_s14 + $0x100] sm:$0xff] }
 0x366   : >> { %1532 = vst [vmem:[%s2275_s27 + $0xf0] sm:$0xff] %v1531_v45  ;;  %1534 = vst [vmem:[%s2275_s27 + $0xf8] sm:$0xff] %v1533_v0  ;;  %v1537_v43 = vld [vmem:[%s2279_s14 + $0x108] sm:$0xff]  ;;  %v1539_v2 = vld [vmem:[%s2279_s14 + $0x110] sm:$0xff] }
 0x367   : >> { %1536 = vst [vmem:[%s2275_s27 + $0x100] sm:$0xff] %v1535_v22  ;;  %v1541_v12 = vld [vmem:[%s2279_s14 + $0x118] sm:$0xff]  ;;  %1538 = vst [vmem:[%s2275_s27 + $0x108] sm:$0xff] %v1537_v43  ;;  %v1543_v13 = vld [vmem:[%s2279_s14 + $0x120] sm:$0xff] }
 0x368   : >> { %1540 = vst [vmem:[%s2275_s27 + $0x110] sm:$0xff] %v1539_v2  ;;  %1542 = vst [vmem:[%s2275_s27 + $0x118] sm:$0xff] %v1541_v12  ;;  %v1545_v14 = vld [vmem:[%s2279_s14 + $0x128] sm:$0xff]  ;;  %s3036_s14 = smov %s2961_s29 }
 0x369   : >> { %1544 = vst [vmem:[%s2275_s27 + $0x120] sm:$0xff] %v1543_v13  ;;  %1546 = vst [vmem:[%s2275_s27 + $0x128] sm:$0xff] %v1545_v14  ;;  %s3035_s27 = smov %s2964_s12 }
 0x36a PF: > { %2215 = sdivrem.u32 %s3042_s24, 38 }
 0x36b   : > { %s1734_s13 = smul.u32 304, %s2888_s9 }
 0x36d   : > { %s1558_s15 = scalar_lea.vmem %s2760_s18, %s1734_s13 [#allocation2]   ;;  %s1560_s16 = scalar_lea.vmem %s2882_s22, %s1734_s13  }
 0x373   : > { %s2216_s17 = spop.drf %2215 }
 0x374   : > { %p1736_p13 = scmp.le.s32.totalorder %s2216_s17, 0 }
 0x375   : > { %s2289_s19 = smov (!%p1736_p13), %s1560_s16   ;;  %s2293_s20 = smov (!%p1736_p13), %s1558_s15  }
 0x376   : > { %1651 = sbr.rel (%p1736_p13) target bundleno = 903 (0x387), region = 143  ;;  %s2297_s21 = smov (!%p1736_p13), 0  }
 0x377   : > { %s2301_s23 = smov (!%p1736_p13), 0  }
 0x37d LB: >> { %v1570_v15 = vld [vmem:[%s2295_s20] sm:$0xff]  ;;  %s1572_s27 = sadd.s32 1, %s2299_s21  ;;  %s1564_s23 = sadd.s32 1, %s2303_s23   ;;  %s2303_s23 = sphi %s2301_s23, %s1564_s23   ;;  %s2299_s21 = sphi %s2297_s21, %s2298_s21   ;;  %s2295_s20 = sphi %s2293_s20, %s1577_s20   ;;  %s2291_s19 = sphi %s2289_s19, %s1578_s19  }
 0x37e   : >> { %1571 = vst [vmem:[%s2291_s19] sm:$0xff] %v1570_v15  ;;  %p1573_p0 = scmp.ge.s32.totalorder %s1572_s27, %s2216_s17  ;;  %p1563_p1 = scmp.ge.s32.totalorder %s1564_s23, %s2216_s17 }
 0x380   : >> { %s3046_s27 = smov (%p1573_p0, %s1572_s27), 0  ;;  %1566 = sbr.rel (!%p1563_p1) target bundleno = 893 (0x37d), region = 149 }
 0x381   : >> { %s1737_s18 = sshll.u32 %s3046_s27, 3  ;;  %s2298_s21 = smov %s3046_s27  }
 0x382   : >> { %s1577_s20 = scalar_lea.vmem %s1558_s15, %s1737_s18 [#allocation2]   ;;  %s1578_s19 = scalar_lea.vmem %s1560_s16, %s1737_s18  }
 0x387 PF: > { %p14_p2 = scmp.ge.s32.totalorder %s2362_s28, 4   ;;  %s3038_s24 = smov %s2267_s25 }
 0x388   : > { %s3039_s25 = smov %s2370_s8  ;;  %s3040_s26 = smov %s2362_s28 }
 0x389   :  { %16 = sbr.rel (!%p14_p2) target bundleno = 2 (0x2), region = 160 }

</bundles_post_ra>
